<compile_context>
chip_gen: v7x
topology: tpu7x:2x2x1
jax: 0.10.0
libtpu: 0.0.40
codegen_flags: <defaults>
</compile_context>

<pallas_src>
import functools

import jax
import jax.numpy as jnp
from jax.experimental import pallas as pl
from jax.experimental.pallas import tpu as pltpu


def _round_up(n: int, m: int) -> int:
    return ((n + m - 1) // m) * m


def _vmem_capacity_bytes() -> int:
    """Physical per-core VMEM; conservative fallback if the query fails."""
    try:
        return int(pltpu.get_tpu_info().vmem_capacity_bytes)
    except Exception:
        return 64 * 2**20          # v7x per-TC capacity (safe lower bound)


def _vmem_bytes_estimate(tile_b, Dp, Hp, mm_itemsize, sp_itemsize, dc_itemsize):
    weights = 2 * Dp * Hp * mm_itemsize + (Hp + Dp) * 4      # resident, 1-buffered
    x_io = 2 * tile_b * Dp * mm_itemsize                     # x, double-buffered
    out_io = 2 * tile_b * (Hp * sp_itemsize + Dp * dc_itemsize)
    loop = 5 * tile_b * Hp * 4                               # enc/work/sparse/key/tmp
    return weights + x_io + out_io + loop + tile_b * Dp * 4


def prepare_topk_sae_params(w_enc, b_enc, w_dec, b_dec, *,
                            matmul_dtype=jnp.bfloat16):
    """Pad & cast weights once at init (hoisted out of the per-call path)."""
    D, H = w_enc.shape
    assert w_dec.shape == (H, D)
    Hp = _round_up(H, 128)
    Dp = _round_up(D, 128)
    mm = jnp.dtype(matmul_dtype)
    we_p = jnp.pad(w_enc, ((0, Dp - D), (0, Hp - H))).astype(mm)
    wd_p = jnp.pad(w_dec, ((0, Hp - H), (0, Dp - D))).astype(mm)
    be_p = jnp.pad(b_enc, (0, Hp - H)).astype(jnp.float32).reshape(1, Hp)
    bd_p = jnp.pad(b_dec, (0, Dp - D)).astype(jnp.float32).reshape(1, Dp)
    return dict(we=we_p, be=be_p, wd=wd_p, bd=bd_p,
                D=D, H=H, Dp=Dp, Hp=Hp, matmul_dtype=mm)


def _topk_sae_kernel(x_ref, we_ref, be_ref, wd_ref, bd_ref,
                     sparse_ref, dec_ref, *, k: int, h_valid: int, unroll):
    # ---- encoder matmul (MXU, f32 accumulation) + bias ----
    enc = jnp.dot(x_ref[...], we_ref[...],
                  preferred_element_type=jnp.float32) + be_ref[...]
    b, hp = enc.shape

    # Loop-invariant negated column index (exact small-integer f32 values).
    # Tie-break rule "largest neg_col" == "lowest column index"; this is the
    # only index array live across the k-loop and it is read once per iter.
    col = jax.lax.broadcasted_iota(jnp.int32, (b, hp), 1)
    neg_col = (-col).astype(jnp.float32)

    # |enc| working copy; padded hidden columns use the same negative sentinel
    # as already-selected entries (abs values are >= 0).
    work0 = jnp.abs(enc)
    if h_valid < hp:
        work0 = jnp.where(col < h_valid, work0, jnp.float32(-1.0))

    neg_sentinel = jnp.float32(-float(hp))       # below every neg_col value

    def body(_, carry):
        work, sparse = carry
        # Pass 1: row max of |enc| (lane reduce).
        m = jnp.max(work, axis=-1, keepdims=True)
        # Pass 2 (fused compare+select+reduce): among maxima take the largest
        # neg_col == lowest column.  `masked` doubles as the selection key, so
        # there is no second index array and no min-index reduction.
        masked = jnp.where(work == m, neg_col, neg_sentinel)
        nidx = jnp.max(masked, axis=-1, keepdims=True)
        sel = masked == nidx                     # exactly one True per row
        # Accumulate the selected value directly and disable the column.
        sparse = jnp.where(sel, enc, sparse)
        work = jnp.where(sel, jnp.float32(-1.0), work)
        return work, sparse

    _, sparse = jax.lax.fori_loop(
        0, k, body, (work0, jnp.zeros_like(enc)), unroll=unroll)

    # ---- decoder matmul (MXU, f32 accumulation) + bias ----
    dec = jnp.dot(sparse.astype(wd_ref.dtype), wd_ref[...],
                  preferred_element_type=jnp.float32) + bd_ref[...]

    sparse_ref[...] = sparse.astype(sparse_ref.dtype)
    dec_ref[...] = dec.astype(dec_ref.dtype)


def topk_sae_forward(x, params, *, k: int, tile_b: int = 128,
                     sparse_dtype=jnp.float32, dec_dtype=jnp.float32):
    """x: (B, D) float32. Returns (sparse_encoded (B, H), decoded (B, D)).

    Note: with matmul_dtype=bfloat16 the top-k *set* may differ from the f32
    reference for near-tied |enc| values; use matmul_dtype=float32 in
    prepare_topk_sae_params for bit-exact module numerics.  NaN inputs are
    not handled specially.
    """
    B, D = x.shape
    assert D == params["D"]
    H, Hp, Dp = params["H"], params["Hp"], params["Dp"]
    assert 1 <= k <= H
    mm = params["matmul_dtype"]
    we_p, be_p, wd_p, bd_p = params["we"], params["be"], params["wd"], params["bd"]
    sp_dt = jnp.dtype(sparse_dtype)
    dc_dt = jnp.dtype(dec_dtype)

    # Batch tile: (8,128)-aligned; auto-shrink until the per-core VMEM plan
    # fits (v7x only has 64 MiB per TC).  On v6e (128 MiB) pass tile_b=256
    # when the kernel is MXU-bound.
    tile_b = max(8, min(int(tile_b), _round_up(B, 8)))
    cap = _vmem_capacity_bytes() - 8 * 2**20
    while tile_b > 8 and _vmem_bytes_estimate(
            tile_b, Dp, Hp, mm.itemsize, sp_dt.itemsize, dc_dt.itemsize) > cap:
        tile_b = max(8, tile_b // 2)
    Bp = _round_up(B, tile_b)

    need = _vmem_bytes_estimate(tile_b, Dp, Hp, mm.itemsize,
                                sp_dt.itemsize, dc_dt.itemsize)
    vmem_limit = int(max(min(cap, max(2 * need, 32 * 2**20)), 16 * 2**20))

    x_p = jnp.pad(x, ((0, Bp - B), (0, Dp - D))).astype(mm)
    grid = (Bp // tile_b,)

    # Full unroll while the k-loop working set is tiny; otherwise bounded
    # unroll=4 so the scheduler can co-issue vld / VALU / XLU.
    unroll = True if tile_b * Hp <= 32 * 1024 else 4
    kernel = functools.partial(_topk_sae_kernel, k=k, h_valid=H, unroll=unroll)

    cost = pl.CostEstimate(
        flops=4 * B * D * H,            # encoder + decoder matmuls
        transcendentals=0,
        bytes_accessed=(x_p.size * x_p.dtype.itemsize
                        + we_p.size * we_p.dtype.itemsize
                        + wd_p.size * wd_p.dtype.itemsize
                        + (Hp + Dp) * 4
                        + Bp * Hp * sp_dt.itemsize + Bp * Dp * dc_dt.itemsize))

    def run(single_buffer_weights: bool):
        resident = (dict(pipeline_mode=pl.Buffered(1))
                    if single_buffer_weights else {})
        return pl.pallas_call(
            kernel,
            out_shape=(jax.ShapeDtypeStruct((Bp, Hp), sp_dt),
                       jax.ShapeDtypeStruct((Bp, Dp), dc_dt)),
            grid_spec=pltpu.PrefetchScalarGridSpec(
                num_scalar_prefetch=0,
                grid=grid,
                in_specs=[
                    pl.BlockSpec((tile_b, Dp), lambda i: (i, 0)),             # x
                    pl.BlockSpec((Dp, Hp), lambda i: (0, 0), **resident),     # W_enc
                    pl.BlockSpec((1, Hp), lambda i: (0, 0), **resident),      # b_enc
                    pl.BlockSpec((Hp, Dp), lambda i: (0, 0), **resident),     # W_dec
                    pl.BlockSpec((1, Dp), lambda i: (0, 0), **resident),      # b_dec
                ],
                out_specs=(
                    pl.BlockSpec((tile_b, Hp), lambda i: (i, 0)),             # sparse
                    pl.BlockSpec((tile_b, Dp), lambda i: (i, 0)),             # decoded
                ),
            ),
            compiler_params=pltpu.CompilerParams(
                dimension_semantics=("parallel",),
                vmem_limit_bytes=vmem_limit),
            cost_estimate=cost,
        )(x_p, we_p, be_p, wd_p, bd_p)

    try:
        sparse_p, dec_p = run(True)
    except Exception:
        # pl.Buffered(1) (single-buffered resident weights) unsupported on this
        # jax version -> default double-buffering (same semantics, more VMEM).
        sparse_p, dec_p = run(False)

    return sparse_p[:B, :H], dec_p[:B, :D]


def _reference(x, w_enc, b_enc, w_dec, b_dec, k):
    """Plain-JAX mirror of the PyTorch forward (torch.topk + scatter)."""
    hi = jax.lax.Precision.HIGHEST
    enc = jnp.dot(x, w_enc, precision=hi) + b_enc
    _, idx = jax.lax.top_k(jnp.abs(enc), k)            # ties -> lowest index
    rows = jnp.arange(enc.shape[0])[:, None]
    mask = jnp.zeros_like(enc).at[rows, idx].set(1.0)
    sparse = enc * mask
    dec = jnp.dot(sparse, w_dec, precision=hi) + b_dec
    return sparse, dec


if __name__ == "__main__":
    # Small shapes consistent with the module: input_dim=32, expansion_factor=2.
    input_dim = 32
    expansion_factor = 2
    hidden_dim = int(input_dim * expansion_factor)      # 64
    k = 8
    batch = 16

    key = jax.random.PRNGKey(0)
    k1, k2, k3 = jax.random.split(key, 3)

    # Deterministic kaiming_normal-style init (std = sqrt(2 / fan_in)), zero biases.
    w_enc = jax.random.normal(k1, (input_dim, hidden_dim), jnp.float32) * jnp.sqrt(
        2.0 / input_dim)
    b_enc = jnp.zeros((hidden_dim,), jnp.float32)
    w_dec = jax.random.normal(k2, (hidden_dim, input_dim), jnp.float32) * jnp.sqrt(
        2.0 / hidden_dim)
    b_dec = jnp.zeros((input_dim,), jnp.float32)
    x = jax.random.normal(k3, (batch, input_dim), jnp.float32)

    # --- exact-semantics path (f32 matmuls) for the correctness check ---
    params_f32 = prepare_topk_sae_params(w_enc, b_enc, w_dec, b_dec,
                                         matmul_dtype=jnp.float32)
    sparse, dec = topk_sae_forward(x, params_f32, k=k)
    jax.block_until_ready((sparse, dec))

    sparse_ref, dec_ref = _reference(x, w_enc, b_enc, w_dec, b_dec, k)
    assert sparse.shape == (batch, hidden_dim) and dec.shape == (batch, input_dim)
    # top-k support matches the reference exactly, with exactly k nonzeros/row
    assert bool(jnp.all((sparse != 0) == (sparse_ref != 0)))
    assert bool(jnp.all(jnp.sum((sparse != 0).astype(jnp.int32), axis=1) == k))
    assert jnp.allclose(sparse, sparse_ref, atol=1e-4, rtol=1e-4)
    assert jnp.allclose(dec, dec_ref, atol=1e-4, rtol=1e-4)

    # --- default fast path: bf16 MXU matmuls (f32 accumulation) + bf16 sparse
    # writeback (smaller HBM output stream; decoded stays f32). ---
    params_bf16 = prepare_topk_sae_params(w_enc, b_enc, w_dec, b_dec)   # bf16
    sparse16, dec16 = topk_sae_forward(x, params_bf16, k=k,
                                       sparse_dtype=jnp.bfloat16)
    jax.block_until_ready((sparse16, dec16))
    assert sparse16.shape == (batch, hidden_dim) and dec16.shape == (batch, input_dim)
    assert bool(jnp.all(jnp.isfinite(sparse16.astype(jnp.float32))))
    assert bool(jnp.all(jnp.isfinite(dec16)))
    assert bool(jnp.all(jnp.sum((sparse16 != 0).astype(jnp.int32), axis=1) == k))

    print("KERNEL_OK")
</pallas_src>

<mosaic_0001>
module attributes {stable_mosaic.version = 11 : i64} {
  func.func @_topk_sae_kernel(%arg0: i32, %arg1: memref<16x128xf32, #tpu.memory_space<vmem>>, %arg2: memref<128x128xf32, #tpu.memory_space<vmem>>, %arg3: memref<1x128xf32, #tpu.memory_space<vmem>>, %arg4: memref<128x128xf32, #tpu.memory_space<vmem>>, %arg5: memref<1x128xf32, #tpu.memory_space<vmem>>, %arg6: memref<16x128xf32, #tpu.memory_space<vmem>>, %arg7: memref<16x128xf32, #tpu.memory_space<vmem>>) attributes {dimension_semantics = [#tpu.dimension_semantics<parallel>], iteration_bounds = array<i64: 1>, scalar_prefetch = 0 : i64, scratch_operands = 0 : i64, tpu.core_type = #tpu.core_type<tc>, window_params = [{transform_indices = @transform_0, window_bounds = array<i64: 16, 128>}, {pipeline_mode = #tpu.pipeline_mode<synchronous>, transform_indices = @transform_1, window_bounds = array<i64: 128, 128>}, {pipeline_mode = #tpu.pipeline_mode<synchronous>, transform_indices = @transform_2, window_bounds = array<i64: 1, 128>}, {pipeline_mode = #tpu.pipeline_mode<synchronous>, transform_indices = @transform_3, window_bounds = array<i64: 128, 128>}, {pipeline_mode = #tpu.pipeline_mode<synchronous>, transform_indices = @transform_4, window_bounds = array<i64: 1, 128>}, {transform_indices = @transform_5, window_bounds = array<i64: 16, 128>}, {transform_indices = @transform_6, window_bounds = array<i64: 16, 128>}]} {
    %c0 = arith.constant 0 : index
    %c0_0 = arith.constant 0 : index
    %0 = vector.load %arg1[%c0, %c0_0] : memref<16x128xf32, #tpu.memory_space<vmem>>, vector<16x128xf32>
    %c0_1 = arith.constant 0 : index
    %c0_2 = arith.constant 0 : index
    %1 = vector.load %arg2[%c0_1, %c0_2] : memref<128x128xf32, #tpu.memory_space<vmem>>, vector<128x128xf32>
    %cst = arith.constant dense<0.000000e+00> : vector<16x128xf32>
    %2 = tpu.matmul %0, %1, %cst {dimension_numbers = #tpu.dot_dimension_numbers<[1], [0], [0], [1], [0, 0, 1, 1], [], []>} : vector<16x128xf32>, vector<128x128xf32>, vector<16x128xf32> -> vector<16x128xf32>
    %c0_3 = arith.constant 0 : index
    %c0_4 = arith.constant 0 : index
    %3 = vector.load %arg3[%c0_3, %c0_4] : memref<1x128xf32, #tpu.memory_space<vmem>>, vector<1x128xf32>
    %4 = vector.broadcast %3 : vector<1x128xf32> to vector<16x128xf32>
    %5 = arith.addf %2, %4 : vector<16x128xf32>
    %6 = tpu.iota {dimensions = array<i32: 1>} : vector<16x128xi32>
    %c0_i32 = arith.constant 0 : i32
    %7 = vector.broadcast %c0_i32 : i32 to vector<16x128xi32>
    %8 = arith.subi %7, %6 : vector<16x128xi32>
    %9 = arith.sitofp %8 : vector<16x128xi32> to vector<16x128xf32>
    %10 = math.absf %5 : vector<16x128xf32>
    %c64_i32 = arith.constant 64 : i32
    %11 = vector.broadcast %c64_i32 : i32 to vector<16x128xi32>
    %12 = arith.cmpi slt, %6, %11 : vector<16x128xi32>
    %cst_5 = arith.constant -1.000000e+00 : f32
    %13 = vector.broadcast %cst_5 : f32 to vector<16x128xf32>
    %14 = arith.select %12, %10, %13 : vector<16x128xi1>, vector<16x128xf32>
    %cst_6 = arith.constant 0.000000e+00 : f32
    %15 = vector.broadcast %cst_6 : f32 to vector<16x128xf32>
    %cst_7 = arith.constant -1.280000e+02 : f32
    %c0_i32_8 = arith.constant 0 : i32
    %cst_9 = arith.constant dense<0xFF800000> : vector<16xf32>
    %16 = vector.multi_reduction <maximumf>, %14, %cst_9 [1] : vector<16x128xf32> to vector<16xf32>
    %17 = vector.shape_cast %16 : vector<16xf32> to vector<16x1xf32>
    %18 = vector.broadcast %17 : vector<16x1xf32> to vector<16x128xf32>
    %19 = arith.cmpf oeq, %14, %18 : vector<16x128xf32>
    %20 = vector.broadcast %cst_7 : f32 to vector<16x128xf32>
    %21 = arith.select %19, %9, %20 : vector<16x128xi1>, vector<16x128xf32>
    %cst_10 = arith.constant dense<0xFF800000> : vector<16xf32>
    %22 = vector.multi_reduction <maximumf>, %21, %cst_10 [1] : vector<16x128xf32> to vector<16xf32>
    %23 = vector.shape_cast %22 : vector<16xf32> to vector<16x1xf32>
    %24 = vector.broadcast %23 : vector<16x1xf32> to vector<16x128xf32>
    %25 = arith.cmpf oeq, %21, %24 : vector<16x128xf32>
    %26 = arith.select %25, %5, %15 : vector<16x128xi1>, vector<16x128xf32>
    %cst_11 = arith.constant -1.000000e+00 : f32
    %27 = vector.broadcast %cst_11 : f32 to vector<16x128xf32>
    %28 = arith.select %25, %27, %14 : vector<16x128xi1>, vector<16x128xf32>
    %c1_i32 = arith.constant 1 : i32
    %cst_12 = arith.constant dense<0xFF800000> : vector<16xf32>
    %29 = vector.multi_reduction <maximumf>, %28, %cst_12 [1] : vector<16x128xf32> to vector<16xf32>
    %30 = vector.shape_cast %29 : vector<16xf32> to vector<16x1xf32>
    %31 = vector.broadcast %30 : vector<16x1xf32> to vector<16x128xf32>
    %32 = arith.cmpf oeq, %28, %31 : vector<16x128xf32>
    %33 = vector.broadcast %cst_7 : f32 to vector<16x128xf32>
    %34 = arith.select %32, %9, %33 : vector<16x128xi1>, vector<16x128xf32>
    %cst_13 = arith.constant dense<0xFF800000> : vector<16xf32>
    %35 = vector.multi_reduction <maximumf>, %34, %cst_13 [1] : vector<16x128xf32> to vector<16xf32>
    %36 = vector.shape_cast %35 : vector<16xf32> to vector<16x1xf32>
    %37 = vector.broadcast %36 : vector<16x1xf32> to vector<16x128xf32>
    %38 = arith.cmpf oeq, %34, %37 : vector<16x128xf32>
    %39 = arith.select %38, %5, %26 : vector<16x128xi1>, vector<16x128xf32>
    %cst_14 = arith.constant -1.000000e+00 : f32
    %40 = vector.broadcast %cst_14 : f32 to vector<16x128xf32>
    %41 = arith.select %38, %40, %28 : vector<16x128xi1>, vector<16x128xf32>
    %c2_i32 = arith.constant 2 : i32
    %cst_15 = arith.constant dense<0xFF800000> : vector<16xf32>
    %42 = vector.multi_reduction <maximumf>, %41, %cst_15 [1] : vector<16x128xf32> to vector<16xf32>
    %43 = vector.shape_cast %42 : vector<16xf32> to vector<16x1xf32>
    %44 = vector.broadcast %43 : vector<16x1xf32> to vector<16x128xf32>
    %45 = arith.cmpf oeq, %41, %44 : vector<16x128xf32>
    %46 = vector.broadcast %cst_7 : f32 to vector<16x128xf32>
    %47 = arith.select %45, %9, %46 : vector<16x128xi1>, vector<16x128xf32>
    %cst_16 = arith.constant dense<0xFF800000> : vector<16xf32>
    %48 = vector.multi_reduction <maximumf>, %47, %cst_16 [1] : vector<16x128xf32> to vector<16xf32>
    %49 = vector.shape_cast %48 : vector<16xf32> to vector<16x1xf32>
    %50 = vector.broadcast %49 : vector<16x1xf32> to vector<16x128xf32>
    %51 = arith.cmpf oeq, %47, %50 : vector<16x128xf32>
    %52 = arith.select %51, %5, %39 : vector<16x128xi1>, vector<16x128xf32>
    %cst_17 = arith.constant -1.000000e+00 : f32
    %53 = vector.broadcast %cst_17 : f32 to vector<16x128xf32>
    %54 = arith.select %51, %53, %41 : vector<16x128xi1>, vector<16x128xf32>
    %c3_i32 = arith.constant 3 : i32
    %cst_18 = arith.constant dense<0xFF800000> : vector<16xf32>
    %55 = vector.multi_reduction <maximumf>, %54, %cst_18 [1] : vector<16x128xf32> to vector<16xf32>
    %56 = vector.shape_cast %55 : vector<16xf32> to vector<16x1xf32>
    %57 = vector.broadcast %56 : vector<16x1xf32> to vector<16x128xf32>
    %58 = arith.cmpf oeq, %54, %57 : vector<16x128xf32>
    %59 = vector.broadcast %cst_7 : f32 to vector<16x128xf32>
    %60 = arith.select %58, %9, %59 : vector<16x128xi1>, vector<16x128xf32>
    %cst_19 = arith.constant dense<0xFF800000> : vector<16xf32>
    %61 = vector.multi_reduction <maximumf>, %60, %cst_19 [1] : vector<16x128xf32> to vector<16xf32>
    %62 = vector.shape_cast %61 : vector<16xf32> to vector<16x1xf32>
    %63 = vector.broadcast %62 : vector<16x1xf32> to vector<16x128xf32>
    %64 = arith.cmpf oeq, %60, %63 : vector<16x128xf32>
    %65 = arith.select %64, %5, %52 : vector<16x128xi1>, vector<16x128xf32>
    %cst_20 = arith.constant -1.000000e+00 : f32
    %66 = vector.broadcast %cst_20 : f32 to vector<16x128xf32>
    %67 = arith.select %64, %66, %54 : vector<16x128xi1>, vector<16x128xf32>
    %c4_i32 = arith.constant 4 : i32
    %cst_21 = arith.constant dense<0xFF800000> : vector<16xf32>
    %68 = vector.multi_reduction <maximumf>, %67, %cst_21 [1] : vector<16x128xf32> to vector<16xf32>
    %69 = vector.shape_cast %68 : vector<16xf32> to vector<16x1xf32>
    %70 = vector.broadcast %69 : vector<16x1xf32> to vector<16x128xf32>
    %71 = arith.cmpf oeq, %67, %70 : vector<16x128xf32>
    %72 = vector.broadcast %cst_7 : f32 to vector<16x128xf32>
    %73 = arith.select %71, %9, %72 : vector<16x128xi1>, vector<16x128xf32>
    %cst_22 = arith.constant dense<0xFF800000> : vector<16xf32>
    %74 = vector.multi_reduction <maximumf>, %73, %cst_22 [1] : vector<16x128xf32> to vector<16xf32>
    %75 = vector.shape_cast %74 : vector<16xf32> to vector<16x1xf32>
    %76 = vector.broadcast %75 : vector<16x1xf32> to vector<16x128xf32>
    %77 = arith.cmpf oeq, %73, %76 : vector<16x128xf32>
    %78 = arith.select %77, %5, %65 : vector<16x128xi1>, vector<16x128xf32>
    %cst_23 = arith.constant -1.000000e+00 : f32
    %79 = vector.broadcast %cst_23 : f32 to vector<16x128xf32>
    %80 = arith.select %77, %79, %67 : vector<16x128xi1>, vector<16x128xf32>
    %c5_i32 = arith.constant 5 : i32
    %cst_24 = arith.constant dense<0xFF800000> : vector<16xf32>
    %81 = vector.multi_reduction <maximumf>, %80, %cst_24 [1] : vector<16x128xf32> to vector<16xf32>
    %82 = vector.shape_cast %81 : vector<16xf32> to vector<16x1xf32>
    %83 = vector.broadcast %82 : vector<16x1xf32> to vector<16x128xf32>
    %84 = arith.cmpf oeq, %80, %83 : vector<16x128xf32>
    %85 = vector.broadcast %cst_7 : f32 to vector<16x128xf32>
    %86 = arith.select %84, %9, %85 : vector<16x128xi1>, vector<16x128xf32>
    %cst_25 = arith.constant dense<0xFF800000> : vector<16xf32>
    %87 = vector.multi_reduction <maximumf>, %86, %cst_25 [1] : vector<16x128xf32> to vector<16xf32>
    %88 = vector.shape_cast %87 : vector<16xf32> to vector<16x1xf32>
    %89 = vector.broadcast %88 : vector<16x1xf32> to vector<16x128xf32>
    %90 = arith.cmpf oeq, %86, %89 : vector<16x128xf32>
    %91 = arith.select %90, %5, %78 : vector<16x128xi1>, vector<16x128xf32>
    %cst_26 = arith.constant -1.000000e+00 : f32
    %92 = vector.broadcast %cst_26 : f32 to vector<16x128xf32>
    %93 = arith.select %90, %92, %80 : vector<16x128xi1>, vector<16x128xf32>
    %c6_i32 = arith.constant 6 : i32
    %cst_27 = arith.constant dense<0xFF800000> : vector<16xf32>
    %94 = vector.multi_reduction <maximumf>, %93, %cst_27 [1] : vector<16x128xf32> to vector<16xf32>
    %95 = vector.shape_cast %94 : vector<16xf32> to vector<16x1xf32>
    %96 = vector.broadcast %95 : vector<16x1xf32> to vector<16x128xf32>
    %97 = arith.cmpf oeq, %93, %96 : vector<16x128xf32>
    %98 = vector.broadcast %cst_7 : f32 to vector<16x128xf32>
    %99 = arith.select %97, %9, %98 : vector<16x128xi1>, vector<16x128xf32>
    %cst_28 = arith.constant dense<0xFF800000> : vector<16xf32>
    %100 = vector.multi_reduction <maximumf>, %99, %cst_28 [1] : vector<16x128xf32> to vector<16xf32>
    %101 = vector.shape_cast %100 : vector<16xf32> to vector<16x1xf32>
    %102 = vector.broadcast %101 : vector<16x1xf32> to vector<16x128xf32>
    %103 = arith.cmpf oeq, %99, %102 : vector<16x128xf32>
    %104 = arith.select %103, %5, %91 : vector<16x128xi1>, vector<16x128xf32>
    %cst_29 = arith.constant -1.000000e+00 : f32
    %105 = vector.broadcast %cst_29 : f32 to vector<16x128xf32>
    %106 = arith.select %103, %105, %93 : vector<16x128xi1>, vector<16x128xf32>
    %c7_i32 = arith.constant 7 : i32
    %cst_30 = arith.constant dense<0xFF800000> : vector<16xf32>
    %107 = vector.multi_reduction <maximumf>, %106, %cst_30 [1] : vector<16x128xf32> to vector<16xf32>
    %108 = vector.shape_cast %107 : vector<16xf32> to vector<16x1xf32>
    %109 = vector.broadcast %108 : vector<16x1xf32> to vector<16x128xf32>
    %110 = arith.cmpf oeq, %106, %109 : vector<16x128xf32>
    %111 = vector.broadcast %cst_7 : f32 to vector<16x128xf32>
    %112 = arith.select %110, %9, %111 : vector<16x128xi1>, vector<16x128xf32>
    %cst_31 = arith.constant dense<0xFF800000> : vector<16xf32>
    %113 = vector.multi_reduction <maximumf>, %112, %cst_31 [1] : vector<16x128xf32> to vector<16xf32>
    %114 = vector.shape_cast %113 : vector<16xf32> to vector<16x1xf32>
    %115 = vector.broadcast %114 : vector<16x1xf32> to vector<16x128xf32>
    %116 = arith.cmpf oeq, %112, %115 : vector<16x128xf32>
    %117 = arith.select %116, %5, %104 : vector<16x128xi1>, vector<16x128xf32>
    %cst_32 = arith.constant -1.000000e+00 : f32
    %118 = vector.broadcast %cst_32 : f32 to vector<16x128xf32>
    %119 = arith.select %116, %118, %106 : vector<16x128xi1>, vector<16x128xf32>
    %c0_33 = arith.constant 0 : index
    %c0_34 = arith.constant 0 : index
    %120 = vector.load %arg4[%c0_33, %c0_34] : memref<128x128xf32, #tpu.memory_space<vmem>>, vector<128x128xf32>
    %cst_35 = arith.constant dense<0.000000e+00> : vector<16x128xf32>
    %121 = tpu.matmul %117, %120, %cst_35 {dimension_numbers = #tpu.dot_dimension_numbers<[1], [0], [0], [1], [0, 0, 1, 1], [], []>} : vector<16x128xf32>, vector<128x128xf32>, vector<16x128xf32> -> vector<16x128xf32>
    %c0_36 = arith.constant 0 : index
    %c0_37 = arith.constant 0 : index
    %122 = vector.load %arg5[%c0_36, %c0_37] : memref<1x128xf32, #tpu.memory_space<vmem>>, vector<1x128xf32>
    %123 = vector.broadcast %122 : vector<1x128xf32> to vector<16x128xf32>
    %124 = arith.addf %121, %123 : vector<16x128xf32>
    %c0_38 = arith.constant 0 : index
    %c0_39 = arith.constant 0 : index
    %125 = vector.load %arg6[%c0_38, %c0_39] : memref<16x128xf32, #tpu.memory_space<vmem>>, vector<16x128xf32>
    tpu.vector_store %arg6[%c0_38, %c0_39], %117 {strides = array<i32>} : memref<16x128xf32, #tpu.memory_space<vmem>>, vector<16x128xf32>,
    %c0_40 = arith.constant 0 : index
    %c0_41 = arith.constant 0 : index
    %126 = vector.load %arg7[%c0_40, %c0_41] : memref<16x128xf32, #tpu.memory_space<vmem>>, vector<16x128xf32>
    tpu.vector_store %arg7[%c0_40, %c0_41], %124 {strides = array<i32>} : memref<16x128xf32, #tpu.memory_space<vmem>>, vector<16x128xf32>,
    return
  }
  func.func @transform_0(%arg0: i32) -> (i32, i32) {
    %c0_i32 = arith.constant 0 : i32
    %c0_i32_0 = arith.constant 0 : i32
    return %arg0, %c0_i32 : i32, i32
  }
  func.func @transform_1(%arg0: i32) -> (i32, i32) {
    %c0_i32 = arith.constant 0 : i32
    %c0_i32_0 = arith.constant 0 : i32
    %c0_i32_1 = arith.constant 0 : i32
    return %c0_i32, %c0_i32_0 : i32, i32
  }
  func.func @transform_2(%arg0: i32) -> (i32, i32) {
    %c0_i32 = arith.constant 0 : i32
    %c0_i32_0 = arith.constant 0 : i32
    %c0_i32_1 = arith.constant 0 : i32
    return %c0_i32, %c0_i32_0 : i32, i32
  }
  func.func @transform_3(%arg0: i32) -> (i32, i32) {
    %c0_i32 = arith.constant 0 : i32
    %c0_i32_0 = arith.constant 0 : i32
    %c0_i32_1 = arith.constant 0 : i32
    return %c0_i32, %c0_i32_0 : i32, i32
  }
  func.func @transform_4(%arg0: i32) -> (i32, i32) {
    %c0_i32 = arith.constant 0 : i32
    %c0_i32_0 = arith.constant 0 : i32
    %c0_i32_1 = arith.constant 0 : i32
    return %c0_i32, %c0_i32_0 : i32, i32
  }
  func.func @transform_5(%arg0: i32) -> (i32, i32) {
    %c0_i32 = arith.constant 0 : i32
    %c0_i32_0 = arith.constant 0 : i32
    return %arg0, %c0_i32 : i32, i32
  }
  func.func @transform_6(%arg0: i32) -> (i32, i32) {
    %c0_i32 = arith.constant 0 : i32
    %c0_i32_0 = arith.constant 0 : i32
    return %arg0, %c0_i32 : i32, i32
  }
}

module attributes {stable_mosaic.version = 11 : i64} {
  func.func @_topk_sae_kernel(%arg0: i32, %arg1: memref<16x128xf32, #tpu.memory_space<vmem>>, %arg2: memref<128x128xf32, #tpu.memory_space<vmem>>, %arg3: memref<1x128xf32, #tpu.memory_space<vmem>>, %arg4: memref<128x128xf32, #tpu.memory_space<vmem>>, %arg5: memref<1x128xf32, #tpu.memory_space<vmem>>, %arg6: memref<16x128xf32, #tpu.memory_space<vmem>>, %arg7: memref<16x128xf32, #tpu.memory_space<vmem>>) attributes {dimension_semantics = [#tpu.dimension_semantics<parallel>], iteration_bounds = array<i64: 1>, scalar_prefetch = 0 : i64, scratch_operands = 0 : i64, tpu.core_type = #tpu.core_type<tc>, window_params = [{transform_indices = @transform_0, window_bounds = array<i64: 16, 128>}, {pipeline_mode = #tpu.pipeline_mode<synchronous>, transform_indices = @transform_1, window_bounds = array<i64: 128, 128>}, {pipeline_mode = #tpu.pipeline_mode<synchronous>, transform_indices = @transform_2, window_bounds = array<i64: 1, 128>}, {pipeline_mode = #tpu.pipeline_mode<synchronous>, transform_indices = @transform_3, window_bounds = array<i64: 128, 128>}, {pipeline_mode = #tpu.pipeline_mode<synchronous>, transform_indices = @transform_4, window_bounds = array<i64: 1, 128>}, {transform_indices = @transform_5, window_bounds = array<i64: 16, 128>}, {transform_indices = @transform_6, window_bounds = array<i64: 16, 128>}]} {
    %c0 = arith.constant 0 : index
    %c0_0 = arith.constant 0 : index
    %0 = vector.load %arg1[%c0, %c0_0] : memref<16x128xf32, #tpu.memory_space<vmem>>, vector<16x128xf32>
    %c0_1 = arith.constant 0 : index
    %c0_2 = arith.constant 0 : index
    %1 = vector.load %arg2[%c0_1, %c0_2] : memref<128x128xf32, #tpu.memory_space<vmem>>, vector<128x128xf32>
    %cst = arith.constant dense<0.000000e+00> : vector<16x128xf32>
    %2 = tpu.matmul %0, %1, %cst {dimension_numbers = #tpu.dot_dimension_numbers<[1], [0], [0], [1], [0, 0, 1, 1], [], []>} : vector<16x128xf32>, vector<128x128xf32>, vector<16x128xf32> -> vector<16x128xf32>
    %c0_3 = arith.constant 0 : index
    %c0_4 = arith.constant 0 : index
    %3 = vector.load %arg3[%c0_3, %c0_4] : memref<1x128xf32, #tpu.memory_space<vmem>>, vector<1x128xf32>
    %4 = vector.broadcast %3 : vector<1x128xf32> to vector<16x128xf32>
    %5 = arith.addf %2, %4 : vector<16x128xf32>
    %6 = tpu.iota {dimensions = array<i32: 1>} : vector<16x128xi32>
    %c0_i32 = arith.constant 0 : i32
    %7 = vector.broadcast %c0_i32 : i32 to vector<16x128xi32>
    %8 = arith.subi %7, %6 : vector<16x128xi32>
    %9 = arith.sitofp %8 : vector<16x128xi32> to vector<16x128xf32>
    %10 = math.absf %5 : vector<16x128xf32>
    %c64_i32 = arith.constant 64 : i32
    %11 = vector.broadcast %c64_i32 : i32 to vector<16x128xi32>
    %12 = arith.cmpi slt, %6, %11 : vector<16x128xi32>
    %cst_5 = arith.constant -1.000000e+00 : f32
    %13 = vector.broadcast %cst_5 : f32 to vector<16x128xf32>
    %14 = arith.select %12, %10, %13 : vector<16x128xi1>, vector<16x128xf32>
    %cst_6 = arith.constant 0.000000e+00 : f32
    %15 = vector.broadcast %cst_6 : f32 to vector<16x128xf32>
    %cst_7 = arith.constant -1.280000e+02 : f32
    %c0_i32_8 = arith.constant 0 : i32
    %cst_9 = arith.constant dense<0xFF800000> : vector<16xf32>
    %16 = vector.multi_reduction <maximumf>, %14, %cst_9 [1] : vector<16x128xf32> to vector<16xf32>
    %17 = vector.shape_cast %16 : vector<16xf32> to vector<16x1xf32>
    %18 = vector.broadcast %17 : vector<16x1xf32> to vector<16x128xf32>
    %19 = arith.cmpf oeq, %14, %18 : vector<16x128xf32>
    %20 = vector.broadcast %cst_7 : f32 to vector<16x128xf32>
    %21 = arith.select %19, %9, %20 : vector<16x128xi1>, vector<16x128xf32>
    %cst_10 = arith.constant dense<0xFF800000> : vector<16xf32>
    %22 = vector.multi_reduction <maximumf>, %21, %cst_10 [1] : vector<16x128xf32> to vector<16xf32>
    %23 = vector.shape_cast %22 : vector<16xf32> to vector<16x1xf32>
    %24 = vector.broadcast %23 : vector<16x1xf32> to vector<16x128xf32>
    %25 = arith.cmpf oeq, %21, %24 : vector<16x128xf32>
    %26 = arith.select %25, %5, %15 : vector<16x128xi1>, vector<16x128xf32>
    %cst_11 = arith.constant -1.000000e+00 : f32
    %27 = vector.broadcast %cst_11 : f32 to vector<16x128xf32>
    %28 = arith.select %25, %27, %14 : vector<16x128xi1>, vector<16x128xf32>
    %c1_i32 = arith.constant 1 : i32
    %cst_12 = arith.constant dense<0xFF800000> : vector<16xf32>
    %29 = vector.multi_reduction <maximumf>, %28, %cst_12 [1] : vector<16x128xf32> to vector<16xf32>
    %30 = vector.shape_cast %29 : vector<16xf32> to vector<16x1xf32>
    %31 = vector.broadcast %30 : vector<16x1xf32> to vector<16x128xf32>
    %32 = arith.cmpf oeq, %28, %31 : vector<16x128xf32>
    %33 = vector.broadcast %cst_7 : f32 to vector<16x128xf32>
    %34 = arith.select %32, %9, %33 : vector<16x128xi1>, vector<16x128xf32>
    %cst_13 = arith.constant dense<0xFF800000> : vector<16xf32>
    %35 = vector.multi_reduction <maximumf>, %34, %cst_13 [1] : vector<16x128xf32> to vector<16xf32>
    %36 = vector.shape_cast %35 : vector<16xf32> to vector<16x1xf32>
    %37 = vector.broadcast %36 : vector<16x1xf32> to vector<16x128xf32>
    %38 = arith.cmpf oeq, %34, %37 : vector<16x128xf32>
    %39 = arith.select %38, %5, %26 : vector<16x128xi1>, vector<16x128xf32>
    %cst_14 = arith.constant -1.000000e+00 : f32
    %40 = vector.broadcast %cst_14 : f32 to vector<16x128xf32>
    %41 = arith.select %38, %40, %28 : vector<16x128xi1>, vector<16x128xf32>
    %c2_i32 = arith.constant 2 : i32
    %cst_15 = arith.constant dense<0xFF800000> : vector<16xf32>
    %42 = vector.multi_reduction <maximumf>, %41, %cst_15 [1] : vector<16x128xf32> to vector<16xf32>
    %43 = vector.shape_cast %42 : vector<16xf32> to vector<16x1xf32>
    %44 = vector.broadcast %43 : vector<16x1xf32> to vector<16x128xf32>
    %45 = arith.cmpf oeq, %41, %44 : vector<16x128xf32>
    %46 = vector.broadcast %cst_7 : f32 to vector<16x128xf32>
    %47 = arith.select %45, %9, %46 : vector<16x128xi1>, vector<16x128xf32>
    %cst_16 = arith.constant dense<0xFF800000> : vector<16xf32>
    %48 = vector.multi_reduction <maximumf>, %47, %cst_16 [1] : vector<16x128xf32> to vector<16xf32>
    %49 = vector.shape_cast %48 : vector<16xf32> to vector<16x1xf32>
    %50 = vector.broadcast %49 : vector<16x1xf32> to vector<16x128xf32>
    %51 = arith.cmpf oeq, %47, %50 : vector<16x128xf32>
    %52 = arith.select %51, %5, %39 : vector<16x128xi1>, vector<16x128xf32>
    %cst_17 = arith.constant -1.000000e+00 : f32
    %53 = vector.broadcast %cst_17 : f32 to vector<16x128xf32>
    %54 = arith.select %51, %53, %41 : vector<16x128xi1>, vector<16x128xf32>
    %c3_i32 = arith.constant 3 : i32
    %cst_18 = arith.constant dense<0xFF800000> : vector<16xf32>
    %55 = vector.multi_reduction <maximumf>, %54, %cst_18 [1] : vector<16x128xf32> to vector<16xf32>
    %56 = vector.shape_cast %55 : vector<16xf32> to vector<16x1xf32>
    %57 = vector.broadcast %56 : vector<16x1xf32> to vector<16x128xf32>
    %58 = arith.cmpf oeq, %54, %57 : vector<16x128xf32>
    %59 = vector.broadcast %cst_7 : f32 to vector<16x128xf32>
    %60 = arith.select %58, %9, %59 : vector<16x128xi1>, vector<16x128xf32>
    %cst_19 = arith.constant dense<0xFF800000> : vector<16xf32>
    %61 = vector.multi_reduction <maximumf>, %60, %cst_19 [1] : vector<16x128xf32> to vector<16xf32>
    %62 = vector.shape_cast %61 : vector<16xf32> to vector<16x1xf32>
    %63 = vector.broadcast %62 : vector<16x1xf32> to vector<16x128xf32>
    %64 = arith.cmpf oeq, %60, %63 : vector<16x128xf32>
    %65 = arith.select %64, %5, %52 : vector<16x128xi1>, vector<16x128xf32>
    %cst_20 = arith.constant -1.000000e+00 : f32
    %66 = vector.broadcast %cst_20 : f32 to vector<16x128xf32>
    %67 = arith.select %64, %66, %54 : vector<16x128xi1>, vector<16x128xf32>
    %c4_i32 = arith.constant 4 : i32
    %cst_21 = arith.constant dense<0xFF800000> : vector<16xf32>
    %68 = vector.multi_reduction <maximumf>, %67, %cst_21 [1] : vector<16x128xf32> to vector<16xf32>
    %69 = vector.shape_cast %68 : vector<16xf32> to vector<16x1xf32>
    %70 = vector.broadcast %69 : vector<16x1xf32> to vector<16x128xf32>
    %71 = arith.cmpf oeq, %67, %70 : vector<16x128xf32>
    %72 = vector.broadcast %cst_7 : f32 to vector<16x128xf32>
    %73 = arith.select %71, %9, %72 : vector<16x128xi1>, vector<16x128xf32>
    %cst_22 = arith.constant dense<0xFF800000> : vector<16xf32>
    %74 = vector.multi_reduction <maximumf>, %73, %cst_22 [1] : vector<16x128xf32> to vector<16xf32>
    %75 = vector.shape_cast %74 : vector<16xf32> to vector<16x1xf32>
    %76 = vector.broadcast %75 : vector<16x1xf32> to vector<16x128xf32>
    %77 = arith.cmpf oeq, %73, %76 : vector<16x128xf32>
    %78 = arith.select %77, %5, %65 : vector<16x128xi1>, vector<16x128xf32>
    %cst_23 = arith.constant -1.000000e+00 : f32
    %79 = vector.broadcast %cst_23 : f32 to vector<16x128xf32>
    %80 = arith.select %77, %79, %67 : vector<16x128xi1>, vector<16x128xf32>
    %c5_i32 = arith.constant 5 : i32
    %cst_24 = arith.constant dense<0xFF800000> : vector<16xf32>
    %81 = vector.multi_reduction <maximumf>, %80, %cst_24 [1] : vector<16x128xf32> to vector<16xf32>
    %82 = vector.shape_cast %81 : vector<16xf32> to vector<16x1xf32>
    %83 = vector.broadcast %82 : vector<16x1xf32> to vector<16x128xf32>
    %84 = arith.cmpf oeq, %80, %83 : vector<16x128xf32>
    %85 = vector.broadcast %cst_7 : f32 to vector<16x128xf32>
    %86 = arith.select %84, %9, %85 : vector<16x128xi1>, vector<16x128xf32>
    %cst_25 = arith.constant dense<0xFF800000> : vector<16xf32>
    %87 = vector.multi_reduction <maximumf>, %86, %cst_25 [1] : vector<16x128xf32> to vector<16xf32>
    %88 = vector.shape_cast %87 : vector<16xf32> to vector<16x1xf32>
    %89 = vector.broadcast %88 : vector<16x1xf32> to vector<16x128xf32>
    %90 = arith.cmpf oeq, %86, %89 : vector<16x128xf32>
    %91 = arith.select %90, %5, %78 : vector<16x128xi1>, vector<16x128xf32>
    %cst_26 = arith.constant -1.000000e+00 : f32
    %92 = vector.broadcast %cst_26 : f32 to vector<16x128xf32>
    %93 = arith.select %90, %92, %80 : vector<16x128xi1>, vector<16x128xf32>
    %c6_i32 = arith.constant 6 : i32
    %cst_27 = arith.constant dense<0xFF800000> : vector<16xf32>
    %94 = vector.multi_reduction <maximumf>, %93, %cst_27 [1] : vector<16x128xf32> to vector<16xf32>
    %95 = vector.shape_cast %94 : vector<16xf32> to vector<16x1xf32>
    %96 = vector.broadcast %95 : vector<16x1xf32> to vector<16x128xf32>
    %97 = arith.cmpf oeq, %93, %96 : vector<16x128xf32>
    %98 = vector.broadcast %cst_7 : f32 to vector<16x128xf32>
    %99 = arith.select %97, %9, %98 : vector<16x128xi1>, vector<16x128xf32>
    %cst_28 = arith.constant dense<0xFF800000> : vector<16xf32>
    %100 = vector.multi_reduction <maximumf>, %99, %cst_28 [1] : vector<16x128xf32> to vector<16xf32>
    %101 = vector.shape_cast %100 : vector<16xf32> to vector<16x1xf32>
    %102 = vector.broadcast %101 : vector<16x1xf32> to vector<16x128xf32>
    %103 = arith.cmpf oeq, %99, %102 : vector<16x128xf32>
    %104 = arith.select %103, %5, %91 : vector<16x128xi1>, vector<16x128xf32>
    %cst_29 = arith.constant -1.000000e+00 : f32
    %105 = vector.broadcast %cst_29 : f32 to vector<16x128xf32>
    %106 = arith.select %103, %105, %93 : vector<16x128xi1>, vector<16x128xf32>
    %c7_i32 = arith.constant 7 : i32
    %cst_30 = arith.constant dense<0xFF800000> : vector<16xf32>
    %107 = vector.multi_reduction <maximumf>, %106, %cst_30 [1] : vector<16x128xf32> to vector<16xf32>
    %108 = vector.shape_cast %107 : vector<16xf32> to vector<16x1xf32>
    %109 = vector.broadcast %108 : vector<16x1xf32> to vector<16x128xf32>
    %110 = arith.cmpf oeq, %106, %109 : vector<16x128xf32>
    %111 = vector.broadcast %cst_7 : f32 to vector<16x128xf32>
    %112 = arith.select %110, %9, %111 : vector<16x128xi1>, vector<16x128xf32>
    %cst_31 = arith.constant dense<0xFF800000> : vector<16xf32>
    %113 = vector.multi_reduction <maximumf>, %112, %cst_31 [1] : vector<16x128xf32> to vector<16xf32>
    %114 = vector.shape_cast %113 : vector<16xf32> to vector<16x1xf32>
    %115 = vector.broadcast %114 : vector<16x1xf32> to vector<16x128xf32>
    %116 = arith.cmpf oeq, %112, %115 : vector<16x128xf32>
    %117 = arith.select %116, %5, %104 : vector<16x128xi1>, vector<16x128xf32>
    %cst_32 = arith.constant -1.000000e+00 : f32
    %118 = vector.broadcast %cst_32 : f32 to vector<16x128xf32>
    %119 = arith.select %116, %118, %106 : vector<16x128xi1>, vector<16x128xf32>
    %c0_33 = arith.constant 0 : index
    %c0_34 = arith.constant 0 : index
    %120 = vector.load %arg4[%c0_33, %c0_34] : memref<128x128xf32, #tpu.memory_space<vmem>>, vector<128x128xf32>
    %cst_35 = arith.constant dense<0.000000e+00> : vector<16x128xf32>
    %121 = tpu.matmul %117, %120, %cst_35 {dimension_numbers = #tpu.dot_dimension_numbers<[1], [0], [0], [1], [0, 0, 1, 1], [], []>} : vector<16x128xf32>, vector<128x128xf32>, vector<16x128xf32> -> vector<16x128xf32>
    %c0_36 = arith.constant 0 : index
    %c0_37 = arith.constant 0 : index
    %122 = vector.load %arg5[%c0_36, %c0_37] : memref<1x128xf32, #tpu.memory_space<vmem>>, vector<1x128xf32>
    %123 = vector.broadcast %122 : vector<1x128xf32> to vector<16x128xf32>
    %124 = arith.addf %121, %123 : vector<16x128xf32>
    %c0_38 = arith.constant 0 : index
    %c0_39 = arith.constant 0 : index
    %125 = vector.load %arg6[%c0_38, %c0_39] : memref<16x128xf32, #tpu.memory_space<vmem>>, vector<16x128xf32>
    tpu.vector_store %arg6[%c0_38, %c0_39], %117 {strides = array<i32>} : memref<16x128xf32, #tpu.memory_space<vmem>>, vector<16x128xf32>,
    %c0_40 = arith.constant 0 : index
    %c0_41 = arith.constant 0 : index
    %126 = vector.load %arg7[%c0_40, %c0_41] : memref<16x128xf32, #tpu.memory_space<vmem>>, vector<16x128xf32>
    tpu.vector_store %arg7[%c0_40, %c0_41], %124 {strides = array<i32>} : memref<16x128xf32, #tpu.memory_space<vmem>>, vector<16x128xf32>,
    return
  }
  func.func @transform_0(%arg0: i32) -> (i32, i32) {
    %c0_i32 = arith.constant 0 : i32
    %c0_i32_0 = arith.constant 0 : i32
    return %arg0, %c0_i32 : i32, i32
  }
  func.func @transform_1(%arg0: i32) -> (i32, i32) {
    %c0_i32 = arith.constant 0 : i32
    %c0_i32_0 = arith.constant 0 : i32
    %c0_i32_1 = arith.constant 0 : i32
    return %c0_i32, %c0_i32_0 : i32, i32
  }
  func.func @transform_2(%arg0: i32) -> (i32, i32) {
    %c0_i32 = arith.constant 0 : i32
    %c0_i32_0 = arith.constant 0 : i32
    %c0_i32_1 = arith.constant 0 : i32
    return %c0_i32, %c0_i32_0 : i32, i32
  }
  func.func @transform_3(%arg0: i32) -> (i32, i32) {
    %c0_i32 = arith.constant 0 : i32
    %c0_i32_0 = arith.constant 0 : i32
    %c0_i32_1 = arith.constant 0 : i32
    return %c0_i32, %c0_i32_0 : i32, i32
  }
  func.func @transform_4(%arg0: i32) -> (i32, i32) {
    %c0_i32 = arith.constant 0 : i32
    %c0_i32_0 = arith.constant 0 : i32
    %c0_i32_1 = arith.constant 0 : i32
    return %c0_i32, %c0_i32_0 : i32, i32
  }
  func.func @transform_5(%arg0: i32) -> (i32, i32) {
    %c0_i32 = arith.constant 0 : i32
    %c0_i32_0 = arith.constant 0 : i32
    return %arg0, %c0_i32 : i32, i32
  }
  func.func @transform_6(%arg0: i32) -> (i32, i32) {
    %c0_i32 = arith.constant 0 : i32
    %c0_i32_0 = arith.constant 0 : i32
    return %arg0, %c0_i32 : i32, i32
  }
}

</mosaic_0001>

<bundles_post_ra>
// kernel: tpu_custom_call.1
= control target key start
LH: loop header
LB: loop body
LE: loop exit
PB: predicated region body
PF: predicated region fallthrough
CT: control target
= control target key end

     0   :  { %12 = vsyncpa [#allocation3], 0  ;;  %s923_s0 = inlined_call_operand.hbm [shape: f32[16,128], index: 0, kind: input, shape index: {}]   ;;  %s924_s1 = inlined_call_operand.hbm [shape: f32[128,128], index: 1, kind: input, shape index: {}]   ;;  %s925_s2 = inlined_call_operand.vmem [shape: f32[1,128], index: 2, kind: input, shape index: {}]   ;;  %s926_s3 = inlined_call_operand.hbm [shape: f32[128,128], index: 3, kind: input, shape index: {}]   ;;  %s927_s4 = inlined_call_operand.vmem [shape: f32[1,128], index: 4, kind: input, shape index: {}]   ;;  %s928_s5 = inlined_call_operand.hbm [shape: f32[16,128], index: 5, kind: output, shape index: {0}]   ;;  %s929_s6 = inlined_call_operand.hbm [shape: f32[16,128], index: 6, kind: output, shape index: {1}]  }
   0x1   :  { %13 = vsyncpa [#allocation6], 0 }
   0x2   :  { %14 = vsyncpa [#allocation4], 0 }
   0x3   :  { %15 = vsyncpa [#allocation10], 0  ;;  %s749_s21 = smov [#allocation5]   ;;  %s750_s23 = smov [#allocation2]  }
   0x4   :  { %s33_s22 = sshll.u32 %s749_s21, 4  ;;  %s21_s24 = sshll.u32 %s750_s23, 4  ;;  %s34_s22 = int_to_ptr.vmem [resolvable:$true] %s33_s22  ;;  %s791_s24 = int_to_ptr.vmem [resolvable:$true] %s21_s24 }
   0x5   :  { %s631_s27 = scalar_lea.hbm %s924_s1, 2048 }
   0x6   :  { %p632_p0 = scmp.ne.s32.totalorder %s924_s1, %s631_s27  ;;  %p635_p1 = scmp.lt.u32.totalorder %s631_s27, %s924_s1 }
   0x8   :  { %p637_p2 = pnand %p635_p1, %p632_p0 }
   0xa   :  { %640 = shalt.err (!%p637_p2)
}
   0xb   :  { %s641_s8 = scalar_lea.vmem %s34_s22, 2048  ;;  %p646_p4 = scmp.lt.s32.totalorder %s34_s22, %s34_s22 }
   0xc   :  { %p642_p3 = scmp.ne.s32.totalorder %s34_s22, %s641_s8  ;;  %p647_p5 = scmp.lt.s32.totalorder %s641_s8, %s641_s8 }
   0xe   :  { %p648_p6 = por %p647_p5, %p646_p4 }
  0x10   :  { %p649_p7 = pnand %p648_p6, %p642_p3 }
  0x12   :  { %652 = shalt.err (!%p649_p7)
}
  0x13   :  { %s751_s9 = smov 128   ;;  %s752_s10 = smov 8  }
  0x14   :  { %39 = dma.hbm_to_vmem [thread:$0]  %s924_s1, 2048, %s34_s22, [#allocation6], %s751_s9, %s751_s9, %s752_s10  }
  0x15   :  { %s653_s15 = scalar_lea.hbm %s923_s0, 256 }
  0x16   :  { %p654_p8 = scmp.ne.s32.totalorder %s923_s0, %s653_s15  ;;  %p657_p9 = scmp.lt.u32.totalorder %s653_s15, %s923_s0 }
  0x18   :  { %p659_p10 = pnand %p657_p9, %p654_p8 }
  0x1a   :  { %662 = shalt.err (!%p659_p10)
}
  0x1b   :  { %s663_s20 = scalar_lea.vmem %s791_s24, 256  ;;  %p668_p12 = scmp.lt.s32.totalorder %s791_s24, %s791_s24 }
  0x1c   :  { %p664_p11 = scmp.ne.s32.totalorder %s791_s24, %s663_s20  ;;  %p669_p13 = scmp.lt.s32.totalorder %s663_s20, %s663_s20 }
  0x1e   :  { %p670_p0 = por %p669_p13, %p668_p12 }
  0x20   :  { %p671_p1 = pnand %p670_p0, %p664_p11 }
  0x22   :  { %674 = shalt.err (!%p671_p1)
}
  0x23   :  { %27 = dma.hbm_to_vmem [thread:$0]  %s923_s0, 256, %s791_s24, [#allocation3], %s751_s9, %s751_s9, %s752_s10  }
  0x24   :  { %s753_s22 = smov [#allocation7]   ;;  %s675_s27 = scalar_lea.hbm %s926_s3, 2048 }
  0x25   :  { %s47_s23 = sshll.u32 %s753_s22, 4  ;;  %p676_p2 = scmp.ne.s32.totalorder %s926_s3, %s675_s27  ;;  %s48_s23 = int_to_ptr.vmem [resolvable:$true] %s47_s23 }
  0x26   :  { %p679_p3 = scmp.lt.u32.totalorder %s675_s27, %s926_s3 }
  0x28   :  { %p681_p4 = pnand %p679_p3, %p676_p2 }
  0x2a   :  { %684 = shalt.err (!%p681_p4)
}
  0x2b   :  { %s685_s8 = scalar_lea.vmem %s48_s23, 2048  ;;  %p690_p6 = scmp.lt.s32.totalorder %s48_s23, %s48_s23 }
  0x2c   :  { %p686_p5 = scmp.ne.s32.totalorder %s48_s23, %s685_s8  ;;  %p691_p7 = scmp.lt.s32.totalorder %s685_s8, %s685_s8 }
  0x2e   :  { %p692_p8 = por %p691_p7, %p690_p6 }
  0x30   :  { %p693_p9 = pnand %p692_p8, %p686_p5 }
  0x32   :  { %696 = shalt.err (!%p693_p9)
}
  0x33   :  { %53 = dma.hbm_to_vmem [thread:$0]  %s926_s3, 2048, %s48_s23, [#allocation6], %s751_s9, %s751_s9, %s752_s10  }
  0x34   :  { %741 = dma.done.wait [#allocation3], 256  }
  0x35   :  { %742 = vsyncadd [#allocation3], 4294967040 }
  0x36   :  { %743 = dma.done.wait [#allocation6], 4096  }
  0x37   :  { %744 = vsyncadd [#allocation6], 4294963200  ;;  %v67_v0 = vld [vmem:[#allocation5] sm:$0xff]  ;;  %v68_v1 = vld [vmem:[#allocation5 + $0x8] sm:$0xff]  ;;  %v165_v26 = vlaneseq }
  0x38   :  { %v69_v2 = vld [vmem:[#allocation5 + $0x10] sm:$0xff]  ;;  %v560_v3 = vpack.c.bf16 %v68_v1, %v67_v0  ;;  %v70_v4 = vld [vmem:[#allocation5 + $0x18] sm:$0xff]  ;;  %v71_v6 = vld [vmem:[#allocation5 + $0x20] sm:$0xff] }
  0x39   :  { %v564_v5 = vpack.c.bf16 %v70_v4, %v69_v2  ;;  %v72_v7 = vld [vmem:[#allocation5 + $0x28] sm:$0xff]  ;;  %v65_v9 = vld [vmem:[#allocation2] sm:$0xff]  ;;  %v74_v11 = vld [vmem:[#allocation5 + $0x38] sm:$0xff]  ;;  %v166_v28 = vand.u32 127, %v165_v26 }
  0x3a   :  { %561 = vmatprep.subr.bf16.mxu0 %v560_v3  ;;  %v568_v8 = vpack.c.bf16 %v72_v7, %v71_v6  ;;  %v73_v10 = vld [vmem:[#allocation5 + $0x30] sm:$0xff]  ;;  %522 = vmatprep.mubr.f32.mxu0 %v65_v9  ;;  %v75_v13 = vld [vmem:[#allocation5 + $0x40] sm:$0xff]  ;;  %v76_v14 = vld [vmem:[#allocation5 + $0x48] sm:$0xff] }
  0x3b   :  { %563 = vmatpush3.bf16.msra.mxu0 %v560_v3  ;;  %v572_v12 = vpack.c.bf16 %v74_v11, %v73_v10  ;;  %v576_v15 = vpack.c.bf16 %v76_v14, %v75_v13  ;;  %v77_v16 = vld [vmem:[#allocation5 + $0x50] sm:$0xff]  ;;  %v78_v17 = vld [vmem:[#allocation5 + $0x58] sm:$0xff]  ;;  %v79_v19 = vld [vmem:[#allocation5 + $0x60] sm:$0xff]  ;;  %vm171_vm0 = vcmp.lt.s32.totalorder %v166_v28, 64  ;;  %v167_v37 = vsub.s32 0, %v166_v28 }
  0x3c   :  { %565 = vmatprep.subr.bf16.mxu0 %v564_v5  ;;  %v580_v18 = vpack.c.bf16 %v78_v17, %v77_v16  ;;  %v80_v20 = vld [vmem:[#allocation5 + $0x68] sm:$0xff]  ;;  %v81_v22 = vld [vmem:[#allocation5 + $0x70] sm:$0xff]  ;;  %v82_v23 = vld [vmem:[#allocation5 + $0x78] sm:$0xff] }
  0x3d   :  { %v584_v21 = vpack.c.bf16 %v80_v20, %v79_v19  ;;  %v588_v24 = vpack.c.bf16 %v82_v23, %v81_v22  ;;  %v66_v25 = vld [vmem:[#allocation2 + $0x8] sm:$0xff]  ;;  %v452_v27 = vld [vmem:[%s925_s2] ss:$0 sm:$0xff]  ;;  %v852_v38 = vcvt.s32.f32 %v167_v37  ;;  %s754_s2 = smov [#allocation8]  }
  0x3e   :  { %s423_s12 = sshll.u32 %s754_s2, 4  ;;  %s424_s12 = int_to_ptr.vmem [resolvable:$true] %s423_s12 }
  0x3f   :  { %567 = vmatpush3.bf16.msra.mxu0 %v564_v5  ;;  %s697_s13 = scalar_lea.vmem %s424_s12, 256  ;;  %p702_p11 = scmp.lt.s32.totalorder %s424_s12, %s424_s12 }
  0x40   :  { %569 = vmatprep.subr.bf16.mxu0 %v568_v8  ;;  %p698_p10 = scmp.ne.s32.totalorder %s424_s12, %s697_s13  ;;  %p703_p12 = scmp.lt.s32.totalorder %s697_s13, %s697_s13 }
  0x42   :  { %p704_p13 = por %p703_p12, %p702_p11 }
  0x43   :  { %571 = vmatpush3.bf16.msra.mxu0 %v568_v8 }
  0x44   :  { %573 = vmatprep.subr.bf16.mxu0 %v572_v12  ;;  %p705_p0 = pnand %p704_p13, %p698_p10 }
  0x47   :  { %575 = vmatpush3.bf16.msra.mxu0 %v572_v12 }
  0x48   :  { %577 = vmatprep.subr.bf16.mxu0 %v576_v15 }
  0x4b   :  { %579 = vmatpush3.bf16.msra.mxu0 %v576_v15 }
  0x4c   :  { %581 = vmatprep.subr.bf16.mxu0 %v580_v18 }
  0x4f   :  { %583 = vmatpush3.bf16.msra.mxu0 %v580_v18 }
  0x50   :  { %585 = vmatprep.subr.bf16.mxu0 %v584_v21 }
  0x53   :  { %587 = vmatpush3.bf16.msra.mxu0 %v584_v21 }
  0x54   :  { %589 = vmatprep.subr.bf16.mxu0 %v588_v24 }
  0x57   :  { %591 = vmatpush3.bf16.msra.mxu0 %v588_v24 }
  0x5a   :  { %523 = vmatmul.mubr.f32.vlgmr.msra.gmra.mrb[0].mxu0 %v66_v25 }
 0x12d   :  { %v524_v29 = vpop.f32.mrb[0].mxu0 }
 0x12e   :  { %v156_v30 = vpop.f32.mrb[1].mxu0  ;;  %v846_v31 = vadd.f32 %v524_v29, %v452_v27 }
 0x12f   :  { %v848_v32 = vadd.f32 %v452_v27, %v156_v30 }
 0x130   :  { %v170_v35 = vand.u32 2147483647, %v846_v31 }
 0x131   :  { %v169_v33 = vand.u32 2147483647, %v848_v32 }
 0x132   :  { %v173_v36 = vsel %vm171_vm0, %v170_v35, -1.0 }
 0x133   :  { %v172_v34 = vsel %vm171_vm0, %v169_v33, -1.0 }
 0x134   :  { %174 = vmax.xlane.f32.xlu0 %v172_v34 }
 0x138   :  { %176 = vmax.xlane.f32.xlu0 %v173_v36 }
 0x1c1   :  { %v175_v39 = vpop.xlane.xlu0 %174 }
 0x1c2   :  { %vm178_vm1 = vcmp.eq.f32.partialorder %v172_v34, %v175_v39 }
 0x1c3   :  { %v180_v40 = vsel %vm178_vm1, %v852_v38, -128.0 }
 0x1c4   :  { %182 = vmax.xlane.f32.xlu1 %v180_v40 }
 0x1c5   :  { %v177_v41 = vpop.xlane.xlu0 %176 }
 0x1c6   :  { %vm179_vm2 = vcmp.eq.f32.partialorder %v173_v36, %v177_v41 }
 0x1c7   :  { %v181_v42 = vsel %vm179_vm2, %v852_v38, -128.0 }
 0x1c8   :  { %184 = vmax.xlane.f32.xlu1 %v181_v42 }
 0x251   :  { %v183_v43 = vpop.xlane.xlu1 %182 }
 0x252   :  { %vm186_vm3 = vcmp.eq.f32.partialorder %v180_v40, %v183_v43 }
 0x253   :  { %v190_v44 = vsel %vm186_vm3, -1.0, %v172_v34  ;;  %v188_v52 = vsel %vm186_vm3, %v848_v32, 0.0 }
 0x254   :  { %192 = vmax.xlane.f32.xlu0 %v190_v44 }
 0x255   :  { %v185_v45 = vpop.xlane.xlu1 %184 }
 0x256   :  { %vm187_vm4 = vcmp.eq.f32.partialorder %v181_v42, %v185_v45 }
 0x257   :  { %v191_v46 = vsel %vm187_vm4, -1.0, %v173_v36  ;;  %v189_v56 = vsel %vm187_vm4, %v846_v31, 0.0 }
 0x258   :  { %194 = vmax.xlane.f32.xlu1 %v191_v46 }
 0x2e1   :  { %v193_v47 = vpop.xlane.xlu0 %192 }
 0x2e2   :  { %vm196_vm5 = vcmp.eq.f32.partialorder %v190_v44, %v193_v47 }
 0x2e3   :  { %v198_v48 = vsel %vm196_vm5, %v852_v38, -128.0 }
 0x2e4   :  { %200 = vmax.xlane.f32.xlu0 %v198_v48 }
 0x2e5   :  { %v195_v49 = vpop.xlane.xlu1 %194 }
 0x2e6   :  { %vm197_vm6 = vcmp.eq.f32.partialorder %v191_v46, %v195_v49  ;;  %v317_v49 = vld [vmem:[#allocation7 + $0x8] sm:$0xff] }
 0x2e7   :  { %v199_v50 = vsel %vm197_vm6, %v852_v38, -128.0 }
 0x2e8   :  { %202 = vmax.xlane.f32.xlu1 %v199_v50 }
 0x371   :  { %v201_v51 = vpop.xlane.xlu0 %200 }
 0x372   :  { %vm204_vm7 = vcmp.eq.f32.partialorder %v198_v48, %v201_v51  ;;  %v316_v48 = vld [vmem:[#allocation7] sm:$0xff] }
 0x373   :  { %v206_v53 = vsel %vm204_vm7, %v848_v32, %v188_v52  ;;  %v208_v54 = vsel %vm204_vm7, -1.0, %v190_v44  ;;  %v592_v51 = vpack.c.bf16 %v317_v49, %v316_v48  ;;  %v319_v52 = vld [vmem:[#allocation7 + $0x18] sm:$0xff] }
 0x374   :  { %210 = vmax.xlane.f32.xlu0 %v208_v54 }
 0x375   :  { %v203_v55 = vpop.xlane.xlu1 %202  ;;  %593 = vmatprep.subr.bf16.mxu1 %v592_v51 }
 0x376   :  { %vm205_vm8 = vcmp.eq.f32.partialorder %v199_v50, %v203_v55  ;;  %v318_v50 = vld [vmem:[#allocation7 + $0x10] sm:$0xff]  ;;  %v321_v55 = vld [vmem:[#allocation7 + $0x28] sm:$0xff]  ;;  %595 = vmatpush3.bf16.msra.mxu1 %v592_v51 }
 0x377   :  { %v207_v57 = vsel %vm205_vm8, %v846_v31, %v189_v56  ;;  %v209_v58 = vsel %vm205_vm8, -1.0, %v191_v46 }
 0x378   :  { %212 = vmax.xlane.f32.xlu1 %v209_v58 }
 0x401   :  { %v211_v59 = vpop.xlane.xlu0 %210 }
 0x402   :  { %vm214_vm9 = vcmp.eq.f32.partialorder %v208_v54, %v211_v59 }
 0x403   :  { %v216_v60 = vsel %vm214_vm9, %v852_v38, -128.0 }
 0x404   :  { %218 = vmax.xlane.f32.xlu0 %v216_v60 }
 0x405   :  { %v213_v61 = vpop.xlane.xlu1 %212 }
 0x406   :  { %vm215_vm10 = vcmp.eq.f32.partialorder %v209_v58, %v213_v61  ;;  %v325_v61 = vld [vmem:[#allocation7 + $0x48] sm:$0xff] }
 0x407   :  { %v217_v62 = vsel %vm215_vm10, %v852_v38, -128.0 }
 0x408   :  { %220 = vmax.xlane.f32.xlu1 %v217_v62 }
 0x491   :  { %v219_v63 = vpop.xlane.xlu0 %218 }
 0x492   :  { %vm222_vm11 = vcmp.eq.f32.partialorder %v216_v60, %v219_v63  ;;  %v324_v60 = vld [vmem:[#allocation7 + $0x40] sm:$0xff]  ;;  %v326_v63 = vld [vmem:[#allocation7 + $0x50] sm:$0xff] }
 0x493   :  { %v224_v0 = vsel %vm222_vm11, %v848_v32, %v206_v53  ;;  %v226_v1 = vsel %vm222_vm11, -1.0, %v208_v54  ;;  %v596_v53 = vpack.c.bf16 %v319_v52, %v318_v50  ;;  %v320_v54 = vld [vmem:[#allocation7 + $0x20] sm:$0xff] }
 0x494   :  { %228 = vmax.xlane.f32.xlu0 %v226_v1  ;;  %v600_v56 = vpack.c.bf16 %v321_v55, %v320_v54 }
 0x495   :  { %v221_v2 = vpop.xlane.xlu1 %220  ;;  %597 = vmatprep.subr.bf16.mxu1 %v596_v53 }
 0x496   :  { %vm223_vm12 = vcmp.eq.f32.partialorder %v217_v62, %v221_v2  ;;  %599 = vmatpush3.bf16.msra.mxu1 %v596_v53  ;;  %v608_v62 = vpack.c.bf16 %v325_v61, %v324_v60  ;;  %v328_v2 = vld [vmem:[#allocation7 + $0x60] sm:$0xff] }
 0x497   :  { %v225_v3 = vsel %vm223_vm12, %v846_v31, %v207_v57  ;;  %v227_v4 = vsel %vm223_vm12, -1.0, %v209_v58  ;;  %v322_v57 = vld [vmem:[#allocation7 + $0x30] sm:$0xff]  ;;  %v323_v58 = vld [vmem:[#allocation7 + $0x38] sm:$0xff]  ;;  %601 = vmatprep.subr.bf16.mxu1 %v600_v56 }
 0x498   :  { %230 = vmax.xlane.f32.xlu1 %v227_v4  ;;  %v604_v59 = vpack.c.bf16 %v323_v58, %v322_v57 }
 0x49a   :  { %603 = vmatpush3.bf16.msra.mxu1 %v600_v56 }
 0x49b   :  { %605 = vmatprep.subr.bf16.mxu1 %v604_v59 }
 0x49e   :  { %607 = vmatpush3.bf16.msra.mxu1 %v604_v59 }
 0x49f   :  { %609 = vmatprep.subr.bf16.mxu1 %v608_v62 }
 0x4a2   :  { %611 = vmatpush3.bf16.msra.mxu1 %v608_v62 }
 0x521   :  { %v229_v5 = vpop.xlane.xlu0 %228 }
 0x522   :  { %vm232_vm13 = vcmp.eq.f32.partialorder %v226_v1, %v229_v5 }
 0x523   :  { %v234_v6 = vsel %vm232_vm13, %v852_v38, -128.0 }
 0x524   :  { %236 = vmax.xlane.f32.xlu0 %v234_v6 }
 0x525   :  { %v231_v7 = vpop.xlane.xlu1 %230 }
 0x526   :  { %vm233_vm14 = vcmp.eq.f32.partialorder %v227_v4, %v231_v7 }
 0x527   :  { %v235_v8 = vsel %vm233_vm14, %v852_v38, -128.0 }
 0x528   :  { %238 = vmax.xlane.f32.xlu1 %v235_v8 }
 0x5b1   :  { %v237_v9 = vpop.xlane.xlu0 %236 }
 0x5b2   :  { %vm240_vm15 = vcmp.eq.f32.partialorder %v234_v6, %v237_v9  ;;  %v330_v9 = vld [vmem:[#allocation7 + $0x70] sm:$0xff] }
 0x5b3   :  { %v242_v10 = vsel %vm240_vm15, %v848_v32, %v224_v0  ;;  %v244_v11 = vsel %vm240_vm15, -1.0, %v226_v1  ;;  %v327_v0 = vld [vmem:[#allocation7 + $0x58] sm:$0xff] }
 0x5b4   :  { %246 = vmax.xlane.f32.xlu0 %v244_v11  ;;  %v612_v1 = vpack.c.bf16 %v327_v0, %v326_v63 }
 0x5b5   :  { %v239_v12 = vpop.xlane.xlu1 %238 }
 0x5b6   :  { %vm241_vm0 = vcmp.eq.f32.partialorder %v235_v8, %v239_v12  ;;  %613 = vmatprep.subr.bf16.mxu1 %v612_v1 }
 0x5b7   :  { %v243_v13 = vsel %vm241_vm0, %v846_v31, %v225_v3  ;;  %v245_v14 = vsel %vm241_vm0, -1.0, %v227_v4  ;;  %v329_v3 = vld [vmem:[#allocation7 + $0x68] sm:$0xff]  ;;  %615 = vmatpush3.bf16.msra.mxu1 %v612_v1 }
 0x5b8   :  { %248 = vmax.xlane.f32.xlu1 %v245_v14  ;;  %v616_v4 = vpack.c.bf16 %v329_v3, %v328_v2 }
 0x5ba   :  { %617 = vmatprep.subr.bf16.mxu1 %v616_v4 }
 0x5bb   :  { %619 = vmatpush3.bf16.msra.mxu1 %v616_v4 }
 0x641   :  { %v247_v15 = vpop.xlane.xlu0 %246 }
 0x642   :  { %vm250_vm1 = vcmp.eq.f32.partialorder %v244_v11, %v247_v15 }
 0x643   :  { %v252_v16 = vsel %vm250_vm1, %v852_v38, -128.0 }
 0x644   :  { %254 = vmax.xlane.f32.xlu0 %v252_v16 }
 0x645   :  { %v249_v17 = vpop.xlane.xlu1 %248 }
 0x646   :  { %vm251_vm2 = vcmp.eq.f32.partialorder %v245_v14, %v249_v17 }
 0x647   :  { %v253_v18 = vsel %vm251_vm2, %v852_v38, -128.0 }
 0x648   :  { %256 = vmax.xlane.f32.xlu1 %v253_v18 }
 0x6d1   :  { %v255_v19 = vpop.xlane.xlu0 %254 }
 0x6d2   :  { %vm258_vm3 = vcmp.eq.f32.partialorder %v252_v16, %v255_v19 }
 0x6d3   :  { %v260_v20 = vsel %vm258_vm3, %v848_v32, %v242_v10  ;;  %v262_v21 = vsel %vm258_vm3, -1.0, %v244_v11  ;;  %v331_v10 = vld [vmem:[#allocation7 + $0x78] sm:$0xff] }
 0x6d4   :  { %264 = vmax.xlane.f32.xlu0 %v262_v21  ;;  %v620_v11 = vpack.c.bf16 %v331_v10, %v330_v9 }
 0x6d5   :  { %v257_v22 = vpop.xlane.xlu1 %256 }
 0x6d6   :  { %vm259_vm4 = vcmp.eq.f32.partialorder %v253_v18, %v257_v22  ;;  %621 = vmatprep.subr.bf16.mxu1 %v620_v11 }
 0x6d7   :  { %v261_v23 = vsel %vm259_vm4, %v846_v31, %v243_v13  ;;  %v263_v24 = vsel %vm259_vm4, -1.0, %v245_v14  ;;  %623 = vmatpush3.bf16.msra.mxu1 %v620_v11 }
 0x6d8   :  { %266 = vmax.xlane.f32.xlu1 %v263_v24 }
 0x761   :  { %v265_v25 = vpop.xlane.xlu0 %264 }
 0x762   :  { %vm268_vm5 = vcmp.eq.f32.partialorder %v262_v21, %v265_v25 }
 0x763   :  { %v270_v26 = vsel %vm268_vm5, %v852_v38, -128.0 }
 0x764   :  { %272 = vmax.xlane.f32.xlu0 %v270_v26 }
 0x765   :  { %v267_v27 = vpop.xlane.xlu1 %266 }
 0x766   :  { %vm269_vm6 = vcmp.eq.f32.partialorder %v263_v24, %v267_v27 }
 0x767   :  { %v271_v28 = vsel %vm269_vm6, %v852_v38, -128.0 }
 0x768   :  { %274 = vmax.xlane.f32.xlu1 %v271_v28 }
 0x7f1   :  { %v273_v29 = vpop.xlane.xlu0 %272 }
 0x7f2   :  { %vm276_vm7 = vcmp.eq.f32.partialorder %v270_v26, %v273_v29 }
 0x7f3   :  { %v278_v30 = vsel %vm276_vm7, %v848_v32, %v260_v20  ;;  %v280_v33 = vsel %vm276_vm7, -1.0, %v262_v21 }
 0x7f4   :  { %282 = vmax.xlane.f32.xlu0 %v280_v33 }
 0x7f5   :  { %v275_v34 = vpop.xlane.xlu1 %274 }
 0x7f6   :  { %vm277_vm8 = vcmp.eq.f32.partialorder %v271_v28, %v275_v34 }
 0x7f7   :  { %v279_v35 = vsel %vm277_vm8, %v846_v31, %v261_v23  ;;  %v281_v36 = vsel %vm277_vm8, -1.0, %v263_v24 }
 0x7f8   :  { %284 = vmax.xlane.f32.xlu1 %v281_v36 }
 0x881   :  { %v283_v37 = vpop.xlane.xlu0 %282 }
 0x882   :  { %vm286_vm9 = vcmp.eq.f32.partialorder %v280_v33, %v283_v37 }
 0x883   :  { %v288_v39 = vsel %vm286_vm9, %v852_v38, -128.0 }
 0x884   :  { %290 = vmax.xlane.f32.xlu0 %v288_v39 }
 0x885   :  { %v285_v40 = vpop.xlane.xlu1 %284 }
 0x886   :  { %vm287_vm10 = vcmp.eq.f32.partialorder %v281_v36, %v285_v40 }
 0x887   :  { %v289_v41 = vsel %vm287_vm10, %v852_v38, -128.0 }
 0x888   :  { %292 = vmax.xlane.f32.xlu1 %v289_v41 }
 0x911   :  { %v291_v42 = vpop.xlane.xlu0 %290 }
 0x912   :  { %vm294_vm11 = vcmp.eq.f32.partialorder %v288_v39, %v291_v42 }
 0x913   :  { %v298_v43 = vsel %vm294_vm11, -1.0, %v280_v33  ;;  %v296_v44 = vsel %vm294_vm11, %v848_v32, %v278_v30 }
 0x914   :  { %300 = vmax.xlane.f32.xlu0 %v298_v43 }
 0x915   :  { %v293_v45 = vpop.xlane.xlu1 %292 }
 0x916   :  { %vm295_vm12 = vcmp.eq.f32.partialorder %v289_v41, %v293_v45 }
 0x917   :  { %v297_v46 = vsel %vm295_vm12, %v846_v31, %v279_v35  ;;  %v299_v47 = vsel %vm295_vm12, -1.0, %v281_v36 }
 0x918   :  { %302 = vmax.xlane.f32.xlu1 %v299_v47 }
 0x9a1   :  { %v301_v5 = vpop.xlane.xlu0 %300 }
 0x9a2   :  { %vm304_vm13 = vcmp.eq.f32.partialorder %v298_v43, %v301_v5 }
 0x9a3   :  { %v306_v6 = vsel %vm304_vm13, %v852_v38, -128.0 }
 0x9a4   :  { %308 = vmax.xlane.f32.xlu0 %v306_v6 }
 0x9a5   :  { %v303_v7 = vpop.xlane.xlu1 %302 }
 0x9a6   :  { %vm305_vm14 = vcmp.eq.f32.partialorder %v299_v47, %v303_v7 }
 0x9a7   :  { %v307_v8 = vsel %vm305_vm14, %v852_v38, -128.0 }
 0x9a8   :  { %310 = vmax.xlane.f32.xlu1 %v307_v8 }
 0xa31   :  { %v309_v12 = vpop.xlane.xlu0 %308 }
 0xa32   :  { %vm312_vm15 = vcmp.eq.f32.partialorder %v306_v6, %v309_v12 }
 0xa33   :  { %v314_v13 = vsel %vm312_vm15, %v848_v32, %v296_v44 }
 0xa34   :  { %557 = vmatprep.mubr.f32.mxu1 %v314_v13  ;;  %414 = vst [vmem:[#allocation8] sm:$0xff] %v314_v13 }
 0xa35   :  { %v311_v14 = vpop.xlane.xlu1 %310 }
 0xa36   :  { %vm313_vm0 = vcmp.eq.f32.partialorder %v307_v8, %v311_v14 }
 0xa37   :  { %v315_v15 = vsel %vm313_vm0, %v846_v31, %v297_v46 }
 0xa38   :  { %558 = vmatmul.mubr.f32.vlgmr.msra.gmra.mrb[0].mxu1 %v315_v15  ;;  %415 = vst [vmem:[#allocation8 + $0x8] sm:$0xff] %v315_v15 }
 0xa39   :  { %708 = shalt.err (!%p705_p0)
}
 0xa3a   :  { %s709_s16 = scalar_lea.hbm %s928_s5, 256 }
 0xa3b   :  { %p710_p1 = scmp.ne.s32.totalorder %s928_s5, %s709_s16  ;;  %p713_p2 = scmp.lt.u32.totalorder %s709_s16, %s928_s5 }
 0xa3d   :  { %p715_p3 = pnand %p713_p2, %p710_p1 }
 0xa3f   :  { %718 = shalt.err (!%p715_p3)
}
 0xa40   :  { %429 = dma.vmem_to_hbm [thread:$0]  %s424_s12, 256, %s928_s5, [#allocation4], %s751_s9, %s751_s9, %s752_s10  }
 0xa41   :  { %v453_v31 = vld [vmem:[%s927_s4] ss:$0 sm:$0xff]  ;;  %s755_s25 = smov [#allocation9]  }
 0xa42   :  { %s435_s26 = sshll.u32 %s755_s25, 4  ;;  %s436_s26 = int_to_ptr.vmem [resolvable:$true] %s435_s26 }
 0xa43   :  { %s719_s27 = scalar_lea.vmem %s436_s26, 256  ;;  %p724_p5 = scmp.lt.s32.totalorder %s436_s26, %s436_s26 }
 0xa44   :  { %p720_p4 = scmp.ne.s32.totalorder %s436_s26, %s719_s27  ;;  %p725_p6 = scmp.lt.s32.totalorder %s719_s27, %s719_s27 }
 0xa46   :  { %p726_p7 = por %p725_p6, %p724_p5 }
 0xa48   :  { %p727_p8 = pnand %p726_p7, %p720_p4 }
 0xb0b   :  { %v559_v32 = vpop.f32.mrb[0].mxu1 }
 0xb0c   :  { %v411_v38 = vadd.f32 %v559_v32, %v453_v31  ;;  %v405_v16 = vpop.f32.mrb[1].mxu1 }
 0xb0d   :  { %v406_v17 = vadd.f32 %v453_v31, %v405_v16 }
 0xb0e   :  { %417 = vst [vmem:[#allocation9 + $0x8] sm:$0xff] %v411_v38 }
 0xb0f   :  { %416 = vst [vmem:[#allocation9] sm:$0xff] %v406_v17 }
 0xb10   :  { %730 = shalt.err (!%p727_p8)
}
 0xb11   :  { %s731_s4 = scalar_lea.hbm %s929_s6, 256 }
 0xb12   :  { %p732_p9 = scmp.ne.s32.totalorder %s929_s6, %s731_s4  ;;  %p735_p10 = scmp.lt.u32.totalorder %s731_s4, %s929_s6 }
 0xb14   :  { %p737_p11 = pnand %p735_p10, %p732_p9 }
 0xb16   :  { %740 = shalt.err (!%p737_p11)
}
 0xb17   :  { %441 = dma.vmem_to_hbm [thread:$0]  %s436_s26, 256, %s929_s6, [#allocation10], %s751_s9, %s751_s9, %s752_s10  }
 0xb18   :  { %745 = dma.done.wait [#allocation4], 256  }
 0xb19   :  { %746 = vsyncadd [#allocation4], 4294967040 }
 0xb1a   :  { %747 = dma.done.wait [#allocation10], 256  }
 0xb1b   :  { %748 = vsyncadd [#allocation10], 4294967040 }
 0xb1c   :  { %448 = vsyncpa [#allocation3], 1 }
 0xb1d   :  { %449 = vsyncpa [#allocation6], 1 }
 0xb1e   :  { %450 = vsyncpa [#allocation4], 1 }
 0xb1f   :  { %451 = vsyncpa [#allocation10], 1 }

// kernel: tpu_custom_call.1
= control target key start
LH: loop header
LB: loop body
LE: loop exit
PB: predicated region body
PF: predicated region fallthrough
CT: control target
= control target key end

     0   :  { %12 = vsyncpa [#allocation3], 0  ;;  %s923_s0 = inlined_call_operand.hbm [shape: f32[16,128], index: 0, kind: input, shape index: {}]   ;;  %s924_s1 = inlined_call_operand.hbm [shape: f32[128,128], index: 1, kind: input, shape index: {}]   ;;  %s925_s2 = inlined_call_operand.vmem [shape: f32[1,128], index: 2, kind: input, shape index: {}]   ;;  %s926_s3 = inlined_call_operand.hbm [shape: f32[128,128], index: 3, kind: input, shape index: {}]   ;;  %s927_s4 = inlined_call_operand.vmem [shape: f32[1,128], index: 4, kind: input, shape index: {}]   ;;  %s928_s5 = inlined_call_operand.hbm [shape: f32[16,128], index: 5, kind: output, shape index: {0}]   ;;  %s929_s6 = inlined_call_operand.hbm [shape: f32[16,128], index: 6, kind: output, shape index: {1}]  }
   0x1   :  { %13 = vsyncpa [#allocation6], 0 }
   0x2   :  { %14 = vsyncpa [#allocation4], 0 }
   0x3   :  { %15 = vsyncpa [#allocation10], 0  ;;  %s749_s21 = smov [#allocation5]   ;;  %s750_s23 = smov [#allocation2]  }
   0x4   :  { %s33_s22 = sshll.u32 %s749_s21, 4  ;;  %s21_s24 = sshll.u32 %s750_s23, 4  ;;  %s34_s22 = int_to_ptr.vmem [resolvable:$true] %s33_s22  ;;  %s791_s24 = int_to_ptr.vmem [resolvable:$true] %s21_s24 }
   0x5   :  { %s631_s27 = scalar_lea.hbm %s924_s1, 2048 }
   0x6   :  { %p632_p0 = scmp.ne.s32.totalorder %s924_s1, %s631_s27  ;;  %p635_p1 = scmp.lt.u32.totalorder %s631_s27, %s924_s1 }
   0x8   :  { %p637_p2 = pnand %p635_p1, %p632_p0 }
   0xa   :  { %640 = shalt.err (!%p637_p2)
}
   0xb   :  { %s641_s8 = scalar_lea.vmem %s34_s22, 2048  ;;  %p646_p4 = scmp.lt.s32.totalorder %s34_s22, %s34_s22 }
   0xc   :  { %p642_p3 = scmp.ne.s32.totalorder %s34_s22, %s641_s8  ;;  %p647_p5 = scmp.lt.s32.totalorder %s641_s8, %s641_s8 }
   0xe   :  { %p648_p6 = por %p647_p5, %p646_p4 }
  0x10   :  { %p649_p7 = pnand %p648_p6, %p642_p3 }
  0x12   :  { %652 = shalt.err (!%p649_p7)
}
  0x13   :  { %s751_s9 = smov 128   ;;  %s752_s10 = smov 8  }
  0x14   :  { %39 = dma.hbm_to_vmem [thread:$0]  %s924_s1, 2048, %s34_s22, [#allocation6], %s751_s9, %s751_s9, %s752_s10  }
  0x15   :  { %s653_s15 = scalar_lea.hbm %s923_s0, 256 }
  0x16   :  { %p654_p8 = scmp.ne.s32.totalorder %s923_s0, %s653_s15  ;;  %p657_p9 = scmp.lt.u32.totalorder %s653_s15, %s923_s0 }
  0x18   :  { %p659_p10 = pnand %p657_p9, %p654_p8 }
  0x1a   :  { %662 = shalt.err (!%p659_p10)
}
  0x1b   :  { %s663_s20 = scalar_lea.vmem %s791_s24, 256  ;;  %p668_p12 = scmp.lt.s32.totalorder %s791_s24, %s791_s24 }
  0x1c   :  { %p664_p11 = scmp.ne.s32.totalorder %s791_s24, %s663_s20  ;;  %p669_p13 = scmp.lt.s32.totalorder %s663_s20, %s663_s20 }
  0x1e   :  { %p670_p0 = por %p669_p13, %p668_p12 }
  0x20   :  { %p671_p1 = pnand %p670_p0, %p664_p11 }
  0x22   :  { %674 = shalt.err (!%p671_p1)
}
  0x23   :  { %27 = dma.hbm_to_vmem [thread:$0]  %s923_s0, 256, %s791_s24, [#allocation3], %s751_s9, %s751_s9, %s752_s10  }
  0x24   :  { %s753_s22 = smov [#allocation7]   ;;  %s675_s27 = scalar_lea.hbm %s926_s3, 2048 }
  0x25   :  { %s47_s23 = sshll.u32 %s753_s22, 4  ;;  %p676_p2 = scmp.ne.s32.totalorder %s926_s3, %s675_s27  ;;  %s48_s23 = int_to_ptr.vmem [resolvable:$true] %s47_s23 }
  0x26   :  { %p679_p3 = scmp.lt.u32.totalorder %s675_s27, %s926_s3 }
  0x28   :  { %p681_p4 = pnand %p679_p3, %p676_p2 }
  0x2a   :  { %684 = shalt.err (!%p681_p4)
}
  0x2b   :  { %s685_s8 = scalar_lea.vmem %s48_s23, 2048  ;;  %p690_p6 = scmp.lt.s32.totalorder %s48_s23, %s48_s23 }
  0x2c   :  { %p686_p5 = scmp.ne.s32.totalorder %s48_s23, %s685_s8  ;;  %p691_p7 = scmp.lt.s32.totalorder %s685_s8, %s685_s8 }
  0x2e   :  { %p692_p8 = por %p691_p7, %p690_p6 }
  0x30   :  { %p693_p9 = pnand %p692_p8, %p686_p5 }
  0x32   :  { %696 = shalt.err (!%p693_p9)
}
  0x33   :  { %53 = dma.hbm_to_vmem [thread:$0]  %s926_s3, 2048, %s48_s23, [#allocation6], %s751_s9, %s751_s9, %s752_s10  }
  0x34   :  { %741 = dma.done.wait [#allocation3], 256  }
  0x35   :  { %742 = vsyncadd [#allocation3], 4294967040 }
  0x36   :  { %743 = dma.done.wait [#allocation6], 4096  }
  0x37   :  { %744 = vsyncadd [#allocation6], 4294963200  ;;  %v67_v0 = vld [vmem:[#allocation5] sm:$0xff]  ;;  %v68_v1 = vld [vmem:[#allocation5 + $0x8] sm:$0xff]  ;;  %v165_v26 = vlaneseq }
  0x38   :  { %v69_v2 = vld [vmem:[#allocation5 + $0x10] sm:$0xff]  ;;  %v560_v3 = vpack.c.bf16 %v68_v1, %v67_v0  ;;  %v70_v4 = vld [vmem:[#allocation5 + $0x18] sm:$0xff]  ;;  %v71_v6 = vld [vmem:[#allocation5 + $0x20] sm:$0xff] }
  0x39   :  { %v564_v5 = vpack.c.bf16 %v70_v4, %v69_v2  ;;  %v72_v7 = vld [vmem:[#allocation5 + $0x28] sm:$0xff]  ;;  %v65_v9 = vld [vmem:[#allocation2] sm:$0xff]  ;;  %v74_v11 = vld [vmem:[#allocation5 + $0x38] sm:$0xff]  ;;  %v166_v28 = vand.u32 127, %v165_v26 }
  0x3a   :  { %561 = vmatprep.subr.bf16.mxu0 %v560_v3  ;;  %v568_v8 = vpack.c.bf16 %v72_v7, %v71_v6  ;;  %v73_v10 = vld [vmem:[#allocation5 + $0x30] sm:$0xff]  ;;  %522 = vmatprep.mubr.f32.mxu0 %v65_v9  ;;  %v75_v13 = vld [vmem:[#allocation5 + $0x40] sm:$0xff]  ;;  %v76_v14 = vld [vmem:[#allocation5 + $0x48] sm:$0xff] }
  0x3b   :  { %563 = vmatpush3.bf16.msra.mxu0 %v560_v3  ;;  %v572_v12 = vpack.c.bf16 %v74_v11, %v73_v10  ;;  %v576_v15 = vpack.c.bf16 %v76_v14, %v75_v13  ;;  %v77_v16 = vld [vmem:[#allocation5 + $0x50] sm:$0xff]  ;;  %v78_v17 = vld [vmem:[#allocation5 + $0x58] sm:$0xff]  ;;  %v79_v19 = vld [vmem:[#allocation5 + $0x60] sm:$0xff]  ;;  %vm171_vm0 = vcmp.lt.s32.totalorder %v166_v28, 64  ;;  %v167_v37 = vsub.s32 0, %v166_v28 }
  0x3c   :  { %565 = vmatprep.subr.bf16.mxu0 %v564_v5  ;;  %v580_v18 = vpack.c.bf16 %v78_v17, %v77_v16  ;;  %v80_v20 = vld [vmem:[#allocation5 + $0x68] sm:$0xff]  ;;  %v81_v22 = vld [vmem:[#allocation5 + $0x70] sm:$0xff]  ;;  %v82_v23 = vld [vmem:[#allocation5 + $0x78] sm:$0xff] }
  0x3d   :  { %v584_v21 = vpack.c.bf16 %v80_v20, %v79_v19  ;;  %v588_v24 = vpack.c.bf16 %v82_v23, %v81_v22  ;;  %v66_v25 = vld [vmem:[#allocation2 + $0x8] sm:$0xff]  ;;  %v452_v27 = vld [vmem:[%s925_s2] ss:$0 sm:$0xff]  ;;  %v852_v38 = vcvt.s32.f32 %v167_v37  ;;  %s754_s2 = smov [#allocation8]  }
  0x3e   :  { %s423_s12 = sshll.u32 %s754_s2, 4  ;;  %s424_s12 = int_to_ptr.vmem [resolvable:$true] %s423_s12 }
  0x3f   :  { %567 = vmatpush3.bf16.msra.mxu0 %v564_v5  ;;  %s697_s13 = scalar_lea.vmem %s424_s12, 256  ;;  %p702_p11 = scmp.lt.s32.totalorder %s424_s12, %s424_s12 }
  0x40   :  { %569 = vmatprep.subr.bf16.mxu0 %v568_v8  ;;  %p698_p10 = scmp.ne.s32.totalorder %s424_s12, %s697_s13  ;;  %p703_p12 = scmp.lt.s32.totalorder %s697_s13, %s697_s13 }
  0x42   :  { %p704_p13 = por %p703_p12, %p702_p11 }
  0x43   :  { %571 = vmatpush3.bf16.msra.mxu0 %v568_v8 }
  0x44   :  { %573 = vmatprep.subr.bf16.mxu0 %v572_v12  ;;  %p705_p0 = pnand %p704_p13, %p698_p10 }
  0x47   :  { %575 = vmatpush3.bf16.msra.mxu0 %v572_v12 }
  0x48   :  { %577 = vmatprep.subr.bf16.mxu0 %v576_v15 }
  0x4b   :  { %579 = vmatpush3.bf16.msra.mxu0 %v576_v15 }
  0x4c   :  { %581 = vmatprep.subr.bf16.mxu0 %v580_v18 }
  0x4f   :  { %583 = vmatpush3.bf16.msra.mxu0 %v580_v18 }
  0x50   :  { %585 = vmatprep.subr.bf16.mxu0 %v584_v21 }
  0x53   :  { %587 = vmatpush3.bf16.msra.mxu0 %v584_v21 }
  0x54   :  { %589 = vmatprep.subr.bf16.mxu0 %v588_v24 }
  0x57   :  { %591 = vmatpush3.bf16.msra.mxu0 %v588_v24 }
  0x5a   :  { %523 = vmatmul.mubr.f32.vlgmr.msra.gmra.mrb[0].mxu0 %v66_v25 }
 0x12d   :  { %v524_v29 = vpop.f32.mrb[0].mxu0 }
 0x12e   :  { %v156_v30 = vpop.f32.mrb[1].mxu0  ;;  %v846_v31 = vadd.f32 %v524_v29, %v452_v27 }
 0x12f   :  { %v848_v32 = vadd.f32 %v452_v27, %v156_v30 }
 0x130   :  { %v170_v35 = vand.u32 2147483647, %v846_v31 }
 0x131   :  { %v169_v33 = vand.u32 2147483647, %v848_v32 }
 0x132   :  { %v173_v36 = vsel %vm171_vm0, %v170_v35, -1.0 }
 0x133   :  { %v172_v34 = vsel %vm171_vm0, %v169_v33, -1.0 }
 0x134   :  { %174 = vmax.xlane.f32.xlu0 %v172_v34 }
 0x138   :  { %176 = vmax.xlane.f32.xlu0 %v173_v36 }
 0x1c1   :  { %v175_v39 = vpop.xlane.xlu0 %174 }
 0x1c2   :  { %vm178_vm1 = vcmp.eq.f32.partialorder %v172_v34, %v175_v39 }
 0x1c3   :  { %v180_v40 = vsel %vm178_vm1, %v852_v38, -128.0 }
 0x1c4   :  { %182 = vmax.xlane.f32.xlu1 %v180_v40 }
 0x1c5   :  { %v177_v41 = vpop.xlane.xlu0 %176 }
 0x1c6   :  { %vm179_vm2 = vcmp.eq.f32.partialorder %v173_v36, %v177_v41 }
 0x1c7   :  { %v181_v42 = vsel %vm179_vm2, %v852_v38, -128.0 }
 0x1c8   :  { %184 = vmax.xlane.f32.xlu1 %v181_v42 }
 0x251   :  { %v183_v43 = vpop.xlane.xlu1 %182 }
 0x252   :  { %vm186_vm3 = vcmp.eq.f32.partialorder %v180_v40, %v183_v43 }
 0x253   :  { %v190_v44 = vsel %vm186_vm3, -1.0, %v172_v34  ;;  %v188_v52 = vsel %vm186_vm3, %v848_v32, 0.0 }
 0x254   :  { %192 = vmax.xlane.f32.xlu0 %v190_v44 }
 0x255   :  { %v185_v45 = vpop.xlane.xlu1 %184 }
 0x256   :  { %vm187_vm4 = vcmp.eq.f32.partialorder %v181_v42, %v185_v45 }
 0x257   :  { %v191_v46 = vsel %vm187_vm4, -1.0, %v173_v36  ;;  %v189_v56 = vsel %vm187_vm4, %v846_v31, 0.0 }
 0x258   :  { %194 = vmax.xlane.f32.xlu1 %v191_v46 }
 0x2e1   :  { %v193_v47 = vpop.xlane.xlu0 %192 }
 0x2e2   :  { %vm196_vm5 = vcmp.eq.f32.partialorder %v190_v44, %v193_v47 }
 0x2e3   :  { %v198_v48 = vsel %vm196_vm5, %v852_v38, -128.0 }
 0x2e4   :  { %200 = vmax.xlane.f32.xlu0 %v198_v48 }
 0x2e5   :  { %v195_v49 = vpop.xlane.xlu1 %194 }
 0x2e6   :  { %vm197_vm6 = vcmp.eq.f32.partialorder %v191_v46, %v195_v49  ;;  %v317_v49 = vld [vmem:[#allocation7 + $0x8] sm:$0xff] }
 0x2e7   :  { %v199_v50 = vsel %vm197_vm6, %v852_v38, -128.0 }
 0x2e8   :  { %202 = vmax.xlane.f32.xlu1 %v199_v50 }
 0x371   :  { %v201_v51 = vpop.xlane.xlu0 %200 }
 0x372   :  { %vm204_vm7 = vcmp.eq.f32.partialorder %v198_v48, %v201_v51  ;;  %v316_v48 = vld [vmem:[#allocation7] sm:$0xff] }
 0x373   :  { %v206_v53 = vsel %vm204_vm7, %v848_v32, %v188_v52  ;;  %v208_v54 = vsel %vm204_vm7, -1.0, %v190_v44  ;;  %v592_v51 = vpack.c.bf16 %v317_v49, %v316_v48  ;;  %v319_v52 = vld [vmem:[#allocation7 + $0x18] sm:$0xff] }
 0x374   :  { %210 = vmax.xlane.f32.xlu0 %v208_v54 }
 0x375   :  { %v203_v55 = vpop.xlane.xlu1 %202  ;;  %593 = vmatprep.subr.bf16.mxu1 %v592_v51 }
 0x376   :  { %vm205_vm8 = vcmp.eq.f32.partialorder %v199_v50, %v203_v55  ;;  %v318_v50 = vld [vmem:[#allocation7 + $0x10] sm:$0xff]  ;;  %v321_v55 = vld [vmem:[#allocation7 + $0x28] sm:$0xff]  ;;  %595 = vmatpush3.bf16.msra.mxu1 %v592_v51 }
 0x377   :  { %v207_v57 = vsel %vm205_vm8, %v846_v31, %v189_v56  ;;  %v209_v58 = vsel %vm205_vm8, -1.0, %v191_v46 }
 0x378   :  { %212 = vmax.xlane.f32.xlu1 %v209_v58 }
 0x401   :  { %v211_v59 = vpop.xlane.xlu0 %210 }
 0x402   :  { %vm214_vm9 = vcmp.eq.f32.partialorder %v208_v54, %v211_v59 }
 0x403   :  { %v216_v60 = vsel %vm214_vm9, %v852_v38, -128.0 }
 0x404   :  { %218 = vmax.xlane.f32.xlu0 %v216_v60 }
 0x405   :  { %v213_v61 = vpop.xlane.xlu1 %212 }
 0x406   :  { %vm215_vm10 = vcmp.eq.f32.partialorder %v209_v58, %v213_v61  ;;  %v325_v61 = vld [vmem:[#allocation7 + $0x48] sm:$0xff] }
 0x407   :  { %v217_v62 = vsel %vm215_vm10, %v852_v38, -128.0 }
 0x408   :  { %220 = vmax.xlane.f32.xlu1 %v217_v62 }
 0x491   :  { %v219_v63 = vpop.xlane.xlu0 %218 }
 0x492   :  { %vm222_vm11 = vcmp.eq.f32.partialorder %v216_v60, %v219_v63  ;;  %v324_v60 = vld [vmem:[#allocation7 + $0x40] sm:$0xff]  ;;  %v326_v63 = vld [vmem:[#allocation7 + $0x50] sm:$0xff] }
 0x493   :  { %v224_v0 = vsel %vm222_vm11, %v848_v32, %v206_v53  ;;  %v226_v1 = vsel %vm222_vm11, -1.0, %v208_v54  ;;  %v596_v53 = vpack.c.bf16 %v319_v52, %v318_v50  ;;  %v320_v54 = vld [vmem:[#allocation7 + $0x20] sm:$0xff] }
 0x494   :  { %228 = vmax.xlane.f32.xlu0 %v226_v1  ;;  %v600_v56 = vpack.c.bf16 %v321_v55, %v320_v54 }
 0x495   :  { %v221_v2 = vpop.xlane.xlu1 %220  ;;  %597 = vmatprep.subr.bf16.mxu1 %v596_v53 }
 0x496   :  { %vm223_vm12 = vcmp.eq.f32.partialorder %v217_v62, %v221_v2  ;;  %599 = vmatpush3.bf16.msra.mxu1 %v596_v53  ;;  %v608_v62 = vpack.c.bf16 %v325_v61, %v324_v60  ;;  %v328_v2 = vld [vmem:[#allocation7 + $0x60] sm:$0xff] }
 0x497   :  { %v225_v3 = vsel %vm223_vm12, %v846_v31, %v207_v57  ;;  %v227_v4 = vsel %vm223_vm12, -1.0, %v209_v58  ;;  %v322_v57 = vld [vmem:[#allocation7 + $0x30] sm:$0xff]  ;;  %v323_v58 = vld [vmem:[#allocation7 + $0x38] sm:$0xff]  ;;  %601 = vmatprep.subr.bf16.mxu1 %v600_v56 }
 0x498   :  { %230 = vmax.xlane.f32.xlu1 %v227_v4  ;;  %v604_v59 = vpack.c.bf16 %v323_v58, %v322_v57 }
 0x49a   :  { %603 = vmatpush3.bf16.msra.mxu1 %v600_v56 }
 0x49b   :  { %605 = vmatprep.subr.bf16.mxu1 %v604_v59 }
 0x49e   :  { %607 = vmatpush3.bf16.msra.mxu1 %v604_v59 }
 0x49f   :  { %609 = vmatprep.subr.bf16.mxu1 %v608_v62 }
 0x4a2   :  { %611 = vmatpush3.bf16.msra.mxu1 %v608_v62 }
 0x521   :  { %v229_v5 = vpop.xlane.xlu0 %228 }
 0x522   :  { %vm232_vm13 = vcmp.eq.f32.partialorder %v226_v1, %v229_v5 }
 0x523   :  { %v234_v6 = vsel %vm232_vm13, %v852_v38, -128.0 }
 0x524   :  { %236 = vmax.xlane.f32.xlu0 %v234_v6 }
 0x525   :  { %v231_v7 = vpop.xlane.xlu1 %230 }
 0x526   :  { %vm233_vm14 = vcmp.eq.f32.partialorder %v227_v4, %v231_v7 }
 0x527   :  { %v235_v8 = vsel %vm233_vm14, %v852_v38, -128.0 }
 0x528   :  { %238 = vmax.xlane.f32.xlu1 %v235_v8 }
 0x5b1   :  { %v237_v9 = vpop.xlane.xlu0 %236 }
 0x5b2   :  { %vm240_vm15 = vcmp.eq.f32.partialorder %v234_v6, %v237_v9  ;;  %v330_v9 = vld [vmem:[#allocation7 + $0x70] sm:$0xff] }
 0x5b3   :  { %v242_v10 = vsel %vm240_vm15, %v848_v32, %v224_v0  ;;  %v244_v11 = vsel %vm240_vm15, -1.0, %v226_v1  ;;  %v327_v0 = vld [vmem:[#allocation7 + $0x58] sm:$0xff] }
 0x5b4   :  { %246 = vmax.xlane.f32.xlu0 %v244_v11  ;;  %v612_v1 = vpack.c.bf16 %v327_v0, %v326_v63 }
 0x5b5   :  { %v239_v12 = vpop.xlane.xlu1 %238 }
 0x5b6   :  { %vm241_vm0 = vcmp.eq.f32.partialorder %v235_v8, %v239_v12  ;;  %613 = vmatprep.subr.bf16.mxu1 %v612_v1 }
 0x5b7   :  { %v243_v13 = vsel %vm241_vm0, %v846_v31, %v225_v3  ;;  %v245_v14 = vsel %vm241_vm0, -1.0, %v227_v4  ;;  %v329_v3 = vld [vmem:[#allocation7 + $0x68] sm:$0xff]  ;;  %615 = vmatpush3.bf16.msra.mxu1 %v612_v1 }
 0x5b8   :  { %248 = vmax.xlane.f32.xlu1 %v245_v14  ;;  %v616_v4 = vpack.c.bf16 %v329_v3, %v328_v2 }
 0x5ba   :  { %617 = vmatprep.subr.bf16.mxu1 %v616_v4 }
 0x5bb   :  { %619 = vmatpush3.bf16.msra.mxu1 %v616_v4 }
 0x641   :  { %v247_v15 = vpop.xlane.xlu0 %246 }
 0x642   :  { %vm250_vm1 = vcmp.eq.f32.partialorder %v244_v11, %v247_v15 }
 0x643   :  { %v252_v16 = vsel %vm250_vm1, %v852_v38, -128.0 }
 0x644   :  { %254 = vmax.xlane.f32.xlu0 %v252_v16 }
 0x645   :  { %v249_v17 = vpop.xlane.xlu1 %248 }
 0x646   :  { %vm251_vm2 = vcmp.eq.f32.partialorder %v245_v14, %v249_v17 }
 0x647   :  { %v253_v18 = vsel %vm251_vm2, %v852_v38, -128.0 }
 0x648   :  { %256 = vmax.xlane.f32.xlu1 %v253_v18 }
 0x6d1   :  { %v255_v19 = vpop.xlane.xlu0 %254 }
 0x6d2   :  { %vm258_vm3 = vcmp.eq.f32.partialorder %v252_v16, %v255_v19 }
 0x6d3   :  { %v260_v20 = vsel %vm258_vm3, %v848_v32, %v242_v10  ;;  %v262_v21 = vsel %vm258_vm3, -1.0, %v244_v11  ;;  %v331_v10 = vld [vmem:[#allocation7 + $0x78] sm:$0xff] }
 0x6d4   :  { %264 = vmax.xlane.f32.xlu0 %v262_v21  ;;  %v620_v11 = vpack.c.bf16 %v331_v10, %v330_v9 }
 0x6d5   :  { %v257_v22 = vpop.xlane.xlu1 %256 }
 0x6d6   :  { %vm259_vm4 = vcmp.eq.f32.partialorder %v253_v18, %v257_v22  ;;  %621 = vmatprep.subr.bf16.mxu1 %v620_v11 }
 0x6d7   :  { %v261_v23 = vsel %vm259_vm4, %v846_v31, %v243_v13  ;;  %v263_v24 = vsel %vm259_vm4, -1.0, %v245_v14  ;;  %623 = vmatpush3.bf16.msra.mxu1 %v620_v11 }
 0x6d8   :  { %266 = vmax.xlane.f32.xlu1 %v263_v24 }
 0x761   :  { %v265_v25 = vpop.xlane.xlu0 %264 }
 0x762   :  { %vm268_vm5 = vcmp.eq.f32.partialorder %v262_v21, %v265_v25 }
 0x763   :  { %v270_v26 = vsel %vm268_vm5, %v852_v38, -128.0 }
 0x764   :  { %272 = vmax.xlane.f32.xlu0 %v270_v26 }
 0x765   :  { %v267_v27 = vpop.xlane.xlu1 %266 }
 0x766   :  { %vm269_vm6 = vcmp.eq.f32.partialorder %v263_v24, %v267_v27 }
 0x767   :  { %v271_v28 = vsel %vm269_vm6, %v852_v38, -128.0 }
 0x768   :  { %274 = vmax.xlane.f32.xlu1 %v271_v28 }
 0x7f1   :  { %v273_v29 = vpop.xlane.xlu0 %272 }
 0x7f2   :  { %vm276_vm7 = vcmp.eq.f32.partialorder %v270_v26, %v273_v29 }
 0x7f3   :  { %v278_v30 = vsel %vm276_vm7, %v848_v32, %v260_v20  ;;  %v280_v33 = vsel %vm276_vm7, -1.0, %v262_v21 }
 0x7f4   :  { %282 = vmax.xlane.f32.xlu0 %v280_v33 }
 0x7f5   :  { %v275_v34 = vpop.xlane.xlu1 %274 }
 0x7f6   :  { %vm277_vm8 = vcmp.eq.f32.partialorder %v271_v28, %v275_v34 }
 0x7f7   :  { %v279_v35 = vsel %vm277_vm8, %v846_v31, %v261_v23  ;;  %v281_v36 = vsel %vm277_vm8, -1.0, %v263_v24 }
 0x7f8   :  { %284 = vmax.xlane.f32.xlu1 %v281_v36 }
 0x881   :  { %v283_v37 = vpop.xlane.xlu0 %282 }
 0x882   :  { %vm286_vm9 = vcmp.eq.f32.partialorder %v280_v33, %v283_v37 }
 0x883   :  { %v288_v39 = vsel %vm286_vm9, %v852_v38, -128.0 }
 0x884   :  { %290 = vmax.xlane.f32.xlu0 %v288_v39 }
 0x885   :  { %v285_v40 = vpop.xlane.xlu1 %284 }
 0x886   :  { %vm287_vm10 = vcmp.eq.f32.partialorder %v281_v36, %v285_v40 }
 0x887   :  { %v289_v41 = vsel %vm287_vm10, %v852_v38, -128.0 }
 0x888   :  { %292 = vmax.xlane.f32.xlu1 %v289_v41 }
 0x911   :  { %v291_v42 = vpop.xlane.xlu0 %290 }
 0x912   :  { %vm294_vm11 = vcmp.eq.f32.partialorder %v288_v39, %v291_v42 }
 0x913   :  { %v298_v43 = vsel %vm294_vm11, -1.0, %v280_v33  ;;  %v296_v44 = vsel %vm294_vm11, %v848_v32, %v278_v30 }
 0x914   :  { %300 = vmax.xlane.f32.xlu0 %v298_v43 }
 0x915   :  { %v293_v45 = vpop.xlane.xlu1 %292 }
 0x916   :  { %vm295_vm12 = vcmp.eq.f32.partialorder %v289_v41, %v293_v45 }
 0x917   :  { %v297_v46 = vsel %vm295_vm12, %v846_v31, %v279_v35  ;;  %v299_v47 = vsel %vm295_vm12, -1.0, %v281_v36 }
 0x918   :  { %302 = vmax.xlane.f32.xlu1 %v299_v47 }
 0x9a1   :  { %v301_v5 = vpop.xlane.xlu0 %300 }
 0x9a2   :  { %vm304_vm13 = vcmp.eq.f32.partialorder %v298_v43, %v301_v5 }
 0x9a3   :  { %v306_v6 = vsel %vm304_vm13, %v852_v38, -128.0 }
 0x9a4   :  { %308 = vmax.xlane.f32.xlu0 %v306_v6 }
 0x9a5   :  { %v303_v7 = vpop.xlane.xlu1 %302 }
 0x9a6   :  { %vm305_vm14 = vcmp.eq.f32.partialorder %v299_v47, %v303_v7 }
 0x9a7   :  { %v307_v8 = vsel %vm305_vm14, %v852_v38, -128.0 }
 0x9a8   :  { %310 = vmax.xlane.f32.xlu1 %v307_v8 }
 0xa31   :  { %v309_v12 = vpop.xlane.xlu0 %308 }
 0xa32   :  { %vm312_vm15 = vcmp.eq.f32.partialorder %v306_v6, %v309_v12 }
 0xa33   :  { %v314_v13 = vsel %vm312_vm15, %v848_v32, %v296_v44 }
 0xa34   :  { %557 = vmatprep.mubr.f32.mxu1 %v314_v13  ;;  %414 = vst [vmem:[#allocation8] sm:$0xff] %v314_v13 }
 0xa35   :  { %v311_v14 = vpop.xlane.xlu1 %310 }
 0xa36   :  { %vm313_vm0 = vcmp.eq.f32.partialorder %v307_v8, %v311_v14 }
 0xa37   :  { %v315_v15 = vsel %vm313_vm0, %v846_v31, %v297_v46 }
 0xa38   :  { %558 = vmatmul.mubr.f32.vlgmr.msra.gmra.mrb[0].mxu1 %v315_v15  ;;  %415 = vst [vmem:[#allocation8 + $0x8] sm:$0xff] %v315_v15 }
 0xa39   :  { %708 = shalt.err (!%p705_p0)
}
 0xa3a   :  { %s709_s16 = scalar_lea.hbm %s928_s5, 256 }
 0xa3b   :  { %p710_p1 = scmp.ne.s32.totalorder %s928_s5, %s709_s16  ;;  %p713_p2 = scmp.lt.u32.totalorder %s709_s16, %s928_s5 }
 0xa3d   :  { %p715_p3 = pnand %p713_p2, %p710_p1 }
 0xa3f   :  { %718 = shalt.err (!%p715_p3)
}
 0xa40   :  { %429 = dma.vmem_to_hbm [thread:$0]  %s424_s12, 256, %s928_s5, [#allocation4], %s751_s9, %s751_s9, %s752_s10  }
 0xa41   :  { %v453_v31 = vld [vmem:[%s927_s4] ss:$0 sm:$0xff]  ;;  %s755_s25 = smov [#allocation9]  }
 0xa42   :  { %s435_s26 = sshll.u32 %s755_s25, 4  ;;  %s436_s26 = int_to_ptr.vmem [resolvable:$true] %s435_s26 }
 0xa43   :  { %s719_s27 = scalar_lea.vmem %s436_s26, 256  ;;  %p724_p5 = scmp.lt.s32.totalorder %s436_s26, %s436_s26 }
 0xa44   :  { %p720_p4 = scmp.ne.s32.totalorder %s436_s26, %s719_s27  ;;  %p725_p6 = scmp.lt.s32.totalorder %s719_s27, %s719_s27 }
 0xa46   :  { %p726_p7 = por %p725_p6, %p724_p5 }
 0xa48   :  { %p727_p8 = pnand %p726_p7, %p720_p4 }
 0xb0b   :  { %v559_v32 = vpop.f32.mrb[0].mxu1 }
 0xb0c   :  { %v411_v38 = vadd.f32 %v559_v32, %v453_v31  ;;  %v405_v16 = vpop.f32.mrb[1].mxu1 }
 0xb0d   :  { %v406_v17 = vadd.f32 %v453_v31, %v405_v16 }
 0xb0e   :  { %417 = vst [vmem:[#allocation9 + $0x8] sm:$0xff] %v411_v38 }
 0xb0f   :  { %416 = vst [vmem:[#allocation9] sm:$0xff] %v406_v17 }
 0xb10   :  { %730 = shalt.err (!%p727_p8)
}
 0xb11   :  { %s731_s4 = scalar_lea.hbm %s929_s6, 256 }
 0xb12   :  { %p732_p9 = scmp.ne.s32.totalorder %s929_s6, %s731_s4  ;;  %p735_p10 = scmp.lt.u32.totalorder %s731_s4, %s929_s6 }
 0xb14   :  { %p737_p11 = pnand %p735_p10, %p732_p9 }
 0xb16   :  { %740 = shalt.err (!%p737_p11)
}
 0xb17   :  { %441 = dma.vmem_to_hbm [thread:$0]  %s436_s26, 256, %s929_s6, [#allocation10], %s751_s9, %s751_s9, %s752_s10  }
 0xb18   :  { %745 = dma.done.wait [#allocation4], 256  }
 0xb19   :  { %746 = vsyncadd [#allocation4], 4294967040 }
 0xb1a   :  { %747 = dma.done.wait [#allocation10], 256  }
 0xb1b   :  { %748 = vsyncadd [#allocation10], 4294967040 }
 0xb1c   :  { %448 = vsyncpa [#allocation3], 1 }
 0xb1d   :  { %449 = vsyncpa [#allocation6], 1 }
 0xb1e   :  { %450 = vsyncpa [#allocation4], 1 }
 0xb1f   :  { %451 = vsyncpa [#allocation10], 1 }

</bundles_post_ra>
